<compile_context>
chip_gen: v6e
topology: v6e:2x2x1
jax: 0.10.0
libtpu: 0.0.40
codegen_flags: <defaults>
</compile_context>

<pallas_src>
import jax
import jax.numpy as jnp
import numpy as np
from jax.experimental import pallas as pl
from jax.experimental.pallas import tpu as pltpu

NUM_LAYERS = 3
EMBED_DIM = 32                               # D
N_NODES = 16                                 # nodes per small graph
GRAPHS_PER_GROUP = 8                         # graphs packed per grid step
GROUP_NODES = GRAPHS_PER_GROUP * N_NODES     # 128 rows  -> full MXU M dim
INNER_DIM = (NUM_LAYERS + 1) * EMBED_DIM     # 128 lanes -> lane-dense concat
BN_EPS = 1e-5


def structure_extractor_kernel(x_ref, adj_ref, w_ref, b_ref, gamma_ref,
                               wout_ref, bias_ref, out_ref, cat_ref):
    # x_ref:   [GROUP_NODES, D]            node features of one PyG-style batch
    # adj_ref: [GROUP_NODES, GROUP_NODES]  block-diagonal normalized adjacency
    # cat_ref: VMEM scratch [GROUP_NODES, 4*D]  normalized-concat buffer
    adj = adj_ref[...]

    def bn_to_cat(h, sl):
        # Training-mode BatchNorm1d on this D-channel slice, written into the
        # lane-dense concat scratch already normalized + gamma-scaled so the
        # scratch is only read once, as the LHS of the out_proj matmul.
        lo = sl * EMBED_DIM
        hi = lo + EMBED_DIM
        mean = jnp.mean(h, axis=0, keepdims=True)
        centered = h - mean
        var = jnp.mean(centered * centered, axis=0, keepdims=True)
        scale = gamma_ref[:, lo:hi] * jax.lax.rsqrt(var + BN_EPS)
        cat_ref[:, lo:hi] = centered * scale

    h = x_ref[...]
    bn_to_cat(h, 0)
    for l in range(NUM_LAYERS):                                       # static unroll
        hw = jnp.dot(h, w_ref[l], preferred_element_type=jnp.float32)     # X W       [128, 32]
        agg = jnp.dot(adj, hw, preferred_element_type=jnp.float32)        # A_hat X W [128, 32]
        h = jnp.maximum(agg + b_ref[l], 0.0)                              # relu(GCNConv)
        bn_to_cat(h, l + 1)

    # out_proj: Linear(4D -> D) on the already-normalized concat slab.
    # bias_ref = beta @ Wout^T + bout  (BN beta folded once in the wrapper).
    out_ref[...] = jnp.dot(cat_ref[...], wout_ref[...],
                           preferred_element_type=jnp.float32) + bias_ref[...]


def structure_extractor(xg, adjg, w, b, gamma, beta, wout_t, bout):
    """xg: [num_groups, GROUP_NODES, D], adjg: [num_groups, GROUP_NODES, GROUP_NODES]."""
    num_groups, gn, d = xg.shape
    inner = (NUM_LAYERS + 1) * d

    # Parameter-only precompute (done once, not per-step): fold BN's beta
    # through the out_proj and merge with the out_proj bias.
    bias_fused = beta @ wout_t + bout                                 # [1, D]

    flops = int(num_groups * (2 * gn * d * d * NUM_LAYERS             # h @ W
                              + 2 * gn * gn * d * NUM_LAYERS          # adj @ (hW)
                              + 2 * gn * inner * d))                  # out_proj
    bytes_accessed = int(4 * (xg.size + adjg.size + w.size + b.size + gamma.size
                              + wout_t.size + bias_fused.size
                              + num_groups * gn * d))
    transcendentals = int(num_groups * inner)                         # rsqrt per BN channel

    return pl.pallas_call(
        structure_extractor_kernel,
        out_shape=jax.ShapeDtypeStruct((num_groups, gn, d), jnp.float32),
        grid_spec=pltpu.PrefetchScalarGridSpec(
            num_scalar_prefetch=0,
            grid=(num_groups,),
            in_specs=[
                # per-group blocks (graph-group axis squeezed out of the kernel)
                pl.BlockSpec((pl.Squeezed(), gn, d), lambda g: (g, 0, 0)),
                pl.BlockSpec((pl.Squeezed(), gn, gn), lambda g: (g, 0, 0)),
                # shared parameters: full-array blocks, resident across the grid
                pl.BlockSpec(w.shape, lambda g: (0, 0, 0)),
                pl.BlockSpec(b.shape, lambda g: (0, 0, 0)),
                pl.BlockSpec(gamma.shape, lambda g: (0, 0)),
                pl.BlockSpec(wout_t.shape, lambda g: (0, 0)),
                pl.BlockSpec(bias_fused.shape, lambda g: (0, 0)),
            ],
            out_specs=pl.BlockSpec((pl.Squeezed(), gn, d), lambda g: (g, 0, 0)),
            scratch_shapes=[pltpu.VMEM((gn, inner), jnp.float32)],
        ),
        compiler_params=pltpu.CompilerParams(
            dimension_semantics=("parallel",)),
        cost_estimate=pl.CostEstimate(flops=flops,
                                      transcendentals=transcendentals,
                                      bytes_accessed=bytes_accessed),
    )(xg, adjg, w, b, gamma, wout_t, bias_fused)


def build_gcn_adjacency(edge_index, num_nodes):
    """Dense A_hat = D^{-1/2}(A + I)D^{-1/2}, PyG GCNConv convention
    (messages flow source -> target; out[dst] += norm * x[src])."""
    src = edge_index[0]
    dst = edge_index[1]
    loops = jnp.arange(num_nodes, dtype=src.dtype)
    src = jnp.concatenate([src, loops])
    dst = jnp.concatenate([dst, loops])
    deg = jnp.zeros((num_nodes,), jnp.float32).at[dst].add(1.0)
    dinv = jnp.where(deg > 0, 1.0 / jnp.sqrt(deg), 0.0)
    norm = dinv[src] * dinv[dst]
    adj = jnp.zeros((num_nodes, num_nodes), jnp.float32).at[dst, src].add(norm)
    return adj


def group_block_diag(adj_b, graphs_per_group):
    """[B, N, N] per-graph adjacencies -> [B//G, G*N, G*N] block-diagonal batches
    (exactly how PyG batches graphs into one big graph)."""
    bsz, n, _ = adj_b.shape
    ng = bsz // graphs_per_group
    a = adj_b.reshape(ng, graphs_per_group, n, n)
    eye = jnp.eye(graphs_per_group, dtype=adj_b.dtype)
    bd = jnp.einsum('hgij,gk->hgikj', a, eye)
    return bd.reshape(ng, graphs_per_group * n, graphs_per_group * n)


def reference_forward(xg, adjg, w, b, gamma, beta, wout_t, bout):
    """Literal PyTorch semantics: GCN stack -> concat -> BatchNorm1d -> Linear."""
    def one(xx, aa):
        cats = [xx]
        h = xx
        for l in range(NUM_LAYERS):
            h = jnp.maximum(aa @ (h @ w[l]) + b[l], 0.0)
            cats.append(h)
        c = jnp.concatenate(cats, axis=-1)
        mean = jnp.mean(c, axis=0, keepdims=True)
        var = jnp.mean((c - mean) ** 2, axis=0, keepdims=True)
        xn = (c - mean) / jnp.sqrt(var + BN_EPS) * gamma + beta
        return xn @ wout_t + bout
    return jax.vmap(one)(xg, adjg)


def make_edge_index(g, n):
    """Deterministic small DAG for graph g: edges i->i+1 and i->i+k, k=2+(g%3)."""
    src1 = np.arange(n - 1)
    dst1 = np.arange(1, n)
    k = 2 + (g % 3)
    src2 = np.arange(n - k)
    dst2 = np.arange(k, n)
    src = np.concatenate([src1, src2])
    dst = np.concatenate([dst1, dst2])
    return jnp.asarray(np.stack([src, dst]), jnp.int32)


if __name__ == "__main__":
    key = jax.random.PRNGKey(0)
    k_x, k_w, k_b, k_g, k_be, k_wo, k_bo = jax.random.split(key, 7)

    num_graphs = 32
    assert num_graphs % GRAPHS_PER_GROUP == 0
    num_groups = num_graphs // GRAPHS_PER_GROUP          # 4 grid steps (2 per TC on v7x)

    # Node features and per-graph normalized adjacencies.
    x = jax.random.normal(k_x, (num_graphs, N_NODES, EMBED_DIM), jnp.float32)
    adjs = jnp.stack([build_gcn_adjacency(make_edge_index(g, N_NODES), N_NODES)
                      for g in range(num_graphs)])

    # Pack 8 graphs per grid step: 128-row node slab + block-diagonal adjacency.
    xg = x.reshape(num_groups, GROUP_NODES, EMBED_DIM)
    adjg = group_block_diag(adjs, GRAPHS_PER_GROUP)

    # Parameters (deterministic, glorot-ish scaling), shared across all graphs.
    w_scale = 1.0 / np.sqrt(EMBED_DIM)
    w = jax.random.uniform(k_w, (NUM_LAYERS, EMBED_DIM, EMBED_DIM),
                           jnp.float32, -w_scale, w_scale)
    b = jax.random.uniform(k_b, (NUM_LAYERS, 1, EMBED_DIM),
                           jnp.float32, -w_scale, w_scale)
    gamma = 1.0 + 0.1 * jax.random.normal(k_g, (1, INNER_DIM), jnp.float32)
    beta = 0.1 * jax.random.normal(k_be, (1, INNER_DIM), jnp.float32)
    wo_scale = 1.0 / np.sqrt(INNER_DIM)
    wout = jax.random.uniform(k_wo, (EMBED_DIM, INNER_DIM),
                              jnp.float32, -wo_scale, wo_scale)  # torch Linear weight [D, 4D]
    wout_t = wout.T                                              # pre-transposed [4D, D]
    bout = jax.random.uniform(k_bo, (1, EMBED_DIM),
                              jnp.float32, -wo_scale, wo_scale)

    out = structure_extractor(xg, adjg, w, b, gamma, beta, wout_t, bout)
    jax.block_until_ready(out)

    ref = reference_forward(xg, adjg, w, b, gamma, beta, wout_t, bout)
    np.testing.assert_allclose(np.asarray(out), np.asarray(ref),
                               rtol=2e-4, atol=2e-4)
    print("KERNEL_OK")
</pallas_src>

<mosaic_0001>
module attributes {stable_mosaic.version = 11 : i64} {
  func.func @structure_extractor_kernel(%arg0: i32, %arg1: memref<1x128x32xf32, #tpu.memory_space<vmem>>, %arg2: memref<1x128x128xf32, #tpu.memory_space<vmem>>, %arg3: memref<3x32x32xf32, #tpu.memory_space<vmem>>, %arg4: memref<3x1x32xf32, #tpu.memory_space<vmem>>, %arg5: memref<1x128xf32, #tpu.memory_space<vmem>>, %arg6: memref<128x32xf32, #tpu.memory_space<vmem>>, %arg7: memref<1x32xf32, #tpu.memory_space<vmem>>, %arg8: memref<1x128x32xf32, #tpu.memory_space<vmem>>, %arg9: memref<128x128xf32, #tpu.memory_space<vmem>>) attributes {dimension_semantics = [#tpu.dimension_semantics<parallel>], iteration_bounds = array<i64: 4>, scalar_prefetch = 0 : i64, scratch_operands = 1 : i64, tpu.core_type = #tpu.core_type<tc>, window_params = [{transform_indices = @transform_0, window_bounds = array<i64: 1, 128, 32>}, {transform_indices = @transform_1, window_bounds = array<i64: 1, 128, 128>}, {pipeline_mode = #tpu.pipeline_mode<synchronous>, transform_indices = @transform_2, window_bounds = array<i64: 3, 32, 32>}, {pipeline_mode = #tpu.pipeline_mode<synchronous>, transform_indices = @transform_3, window_bounds = array<i64: 3, 1, 32>}, {pipeline_mode = #tpu.pipeline_mode<synchronous>, transform_indices = @transform_4, window_bounds = array<i64: 1, 128>}, {pipeline_mode = #tpu.pipeline_mode<synchronous>, transform_indices = @transform_5, window_bounds = array<i64: 128, 32>}, {pipeline_mode = #tpu.pipeline_mode<synchronous>, transform_indices = @transform_6, window_bounds = array<i64: 1, 32>}, {transform_indices = @transform_7, window_bounds = array<i64: 1, 128, 32>}]} {
    %c0 = arith.constant 0 : index
    %c0_0 = arith.constant 0 : index
    %c0_1 = arith.constant 0 : index
    %0 = vector.load %arg2[%c0, %c0_0, %c0_1] : memref<1x128x128xf32, #tpu.memory_space<vmem>>, vector<1x128x128xf32>
    %1 = vector.shape_cast %0 : vector<1x128x128xf32> to vector<128x128xf32>
    %c0_2 = arith.constant 0 : index
    %c0_3 = arith.constant 0 : index
    %c0_4 = arith.constant 0 : index
    %2 = vector.load %arg1[%c0_2, %c0_3, %c0_4] : memref<1x128x32xf32, #tpu.memory_space<vmem>>, vector<1x128x32xf32>
    %3 = vector.shape_cast %2 : vector<1x128x32xf32> to vector<128x32xf32>
    %cst = arith.constant dense<0.000000e+00> : vector<32xf32>
    %4 = vector.multi_reduction <add>, %3, %cst [0] : vector<128x32xf32> to vector<32xf32>
    %5 = vector.shape_cast %4 : vector<32xf32> to vector<1x32xf32>
    %cst_5 = arith.constant 1.280000e+02 : f32
    %6 = vector.broadcast %cst_5 : f32 to vector<1x32xf32>
    %7 = arith.divf %5, %6 : vector<1x32xf32>
    %8 = vector.broadcast %7 : vector<1x32xf32> to vector<128x32xf32>
    %9 = arith.subf %3, %8 : vector<128x32xf32>
    %10 = arith.mulf %9, %9 : vector<128x32xf32>
    %cst_6 = arith.constant dense<0.000000e+00> : vector<32xf32>
    %11 = vector.multi_reduction <add>, %10, %cst_6 [0] : vector<128x32xf32> to vector<32xf32>
    %12 = vector.shape_cast %11 : vector<32xf32> to vector<1x32xf32>
    %cst_7 = arith.constant 1.280000e+02 : f32
    %13 = vector.broadcast %cst_7 : f32 to vector<1x32xf32>
    %14 = arith.divf %12, %13 : vector<1x32xf32>
    %c0_8 = arith.constant 0 : index
    %c0_9 = arith.constant 0 : index
    %15 = vector.load %arg5[%c0_8, %c0_9] : memref<1x128xf32, #tpu.memory_space<vmem>>, vector<1x32xf32>
    %cst_10 = arith.constant 9.99999974E-6 : f32
    %16 = vector.broadcast %cst_10 : f32 to vector<1x32xf32>
    %17 = arith.addf %14, %16 : vector<1x32xf32>
    %18 = math.rsqrt %17 : vector<1x32xf32>
    %19 = arith.mulf %15, %18 : vector<1x32xf32>
    %20 = vector.broadcast %19 : vector<1x32xf32> to vector<128x32xf32>
    %21 = arith.mulf %9, %20 : vector<128x32xf32>
    %c0_11 = arith.constant 0 : index
    %c0_12 = arith.constant 0 : index
    %22 = vector.load %arg9[%c0_11, %c0_12] : memref<128x128xf32, #tpu.memory_space<vmem>>, vector<128x32xf32>
    tpu.vector_store %arg9[%c0_11, %c0_12], %21 {strides = array<i32>} : memref<128x128xf32, #tpu.memory_space<vmem>>, vector<128x32xf32>,
    %c0_13 = arith.constant 0 : index
    %c0_14 = arith.constant 0 : index
    %c0_15 = arith.constant 0 : index
    %23 = vector.load %arg3[%c0_13, %c0_14, %c0_15] : memref<3x32x32xf32, #tpu.memory_space<vmem>>, vector<1x32x32xf32>
    %24 = vector.shape_cast %23 : vector<1x32x32xf32> to vector<32x32xf32>
    %cst_16 = arith.constant dense<0.000000e+00> : vector<128x32xf32>
    %25 = tpu.matmul %3, %24, %cst_16 {dimension_numbers = #tpu.dot_dimension_numbers<[1], [0], [0], [1], [0, 0, 1, 1], [], []>} : vector<128x32xf32>, vector<32x32xf32>, vector<128x32xf32> -> vector<128x32xf32>
    %cst_17 = arith.constant dense<0.000000e+00> : vector<128x32xf32>
    %26 = tpu.matmul %1, %25, %cst_17 {dimension_numbers = #tpu.dot_dimension_numbers<[1], [0], [0], [1], [0, 0, 1, 1], [], []>} : vector<128x128xf32>, vector<128x32xf32>, vector<128x32xf32> -> vector<128x32xf32>
    %c0_18 = arith.constant 0 : index
    %c0_19 = arith.constant 0 : index
    %c0_20 = arith.constant 0 : index
    %27 = vector.load %arg4[%c0_18, %c0_19, %c0_20] : memref<3x1x32xf32, #tpu.memory_space<vmem>>, vector<1x1x32xf32>
    %28 = vector.shape_cast %27 : vector<1x1x32xf32> to vector<1x32xf32>
    %29 = vector.broadcast %28 : vector<1x32xf32> to vector<128x32xf32>
    %30 = arith.addf %26, %29 : vector<128x32xf32>
    %cst_21 = arith.constant 0.000000e+00 : f32
    %31 = vector.broadcast %cst_21 : f32 to vector<128x32xf32>
    %32 = arith.maximumf %30, %31 : vector<128x32xf32>
    %cst_22 = arith.constant dense<0.000000e+00> : vector<32xf32>
    %33 = vector.multi_reduction <add>, %32, %cst_22 [0] : vector<128x32xf32> to vector<32xf32>
    %34 = vector.shape_cast %33 : vector<32xf32> to vector<1x32xf32>
    %cst_23 = arith.constant 1.280000e+02 : f32
    %35 = vector.broadcast %cst_23 : f32 to vector<1x32xf32>
    %36 = arith.divf %34, %35 : vector<1x32xf32>
    %37 = vector.broadcast %36 : vector<1x32xf32> to vector<128x32xf32>
    %38 = arith.subf %32, %37 : vector<128x32xf32>
    %39 = arith.mulf %38, %38 : vector<128x32xf32>
    %cst_24 = arith.constant dense<0.000000e+00> : vector<32xf32>
    %40 = vector.multi_reduction <add>, %39, %cst_24 [0] : vector<128x32xf32> to vector<32xf32>
    %41 = vector.shape_cast %40 : vector<32xf32> to vector<1x32xf32>
    %cst_25 = arith.constant 1.280000e+02 : f32
    %42 = vector.broadcast %cst_25 : f32 to vector<1x32xf32>
    %43 = arith.divf %41, %42 : vector<1x32xf32>
    %c0_26 = arith.constant 0 : index
    %c32 = arith.constant 32 : index
    %44 = vector.load %arg5[%c0_26, %c32] : memref<1x128xf32, #tpu.memory_space<vmem>>, vector<1x32xf32>
    %cst_27 = arith.constant 9.99999974E-6 : f32
    %45 = vector.broadcast %cst_27 : f32 to vector<1x32xf32>
    %46 = arith.addf %43, %45 : vector<1x32xf32>
    %47 = math.rsqrt %46 : vector<1x32xf32>
    %48 = arith.mulf %44, %47 : vector<1x32xf32>
    %49 = vector.broadcast %48 : vector<1x32xf32> to vector<128x32xf32>
    %50 = arith.mulf %38, %49 : vector<128x32xf32>
    %c0_28 = arith.constant 0 : index
    %c32_29 = arith.constant 32 : index
    %51 = vector.load %arg9[%c0_28, %c32_29] : memref<128x128xf32, #tpu.memory_space<vmem>>, vector<128x32xf32>
    tpu.vector_store %arg9[%c0_28, %c32_29], %50 {strides = array<i32>} : memref<128x128xf32, #tpu.memory_space<vmem>>, vector<128x32xf32>,
    %c1 = arith.constant 1 : index
    %c0_30 = arith.constant 0 : index
    %c0_31 = arith.constant 0 : index
    %52 = vector.load %arg3[%c1, %c0_30, %c0_31] : memref<3x32x32xf32, #tpu.memory_space<vmem>>, vector<1x32x32xf32>
    %53 = vector.shape_cast %52 : vector<1x32x32xf32> to vector<32x32xf32>
    %cst_32 = arith.constant dense<0.000000e+00> : vector<128x32xf32>
    %54 = tpu.matmul %32, %53, %cst_32 {dimension_numbers = #tpu.dot_dimension_numbers<[1], [0], [0], [1], [0, 0, 1, 1], [], []>} : vector<128x32xf32>, vector<32x32xf32>, vector<128x32xf32> -> vector<128x32xf32>
    %cst_33 = arith.constant dense<0.000000e+00> : vector<128x32xf32>
    %55 = tpu.matmul %1, %54, %cst_33 {dimension_numbers = #tpu.dot_dimension_numbers<[1], [0], [0], [1], [0, 0, 1, 1], [], []>} : vector<128x128xf32>, vector<128x32xf32>, vector<128x32xf32> -> vector<128x32xf32>
    %c1_34 = arith.constant 1 : index
    %c0_35 = arith.constant 0 : index
    %c0_36 = arith.constant 0 : index
    %56 = vector.load %arg4[%c1_34, %c0_35, %c0_36] : memref<3x1x32xf32, #tpu.memory_space<vmem>>, vector<1x1x32xf32>
    %57 = vector.shape_cast %56 : vector<1x1x32xf32> to vector<1x32xf32>
    %58 = vector.broadcast %57 : vector<1x32xf32> to vector<128x32xf32>
    %59 = arith.addf %55, %58 : vector<128x32xf32>
    %cst_37 = arith.constant 0.000000e+00 : f32
    %60 = vector.broadcast %cst_37 : f32 to vector<128x32xf32>
    %61 = arith.maximumf %59, %60 : vector<128x32xf32>
    %cst_38 = arith.constant dense<0.000000e+00> : vector<32xf32>
    %62 = vector.multi_reduction <add>, %61, %cst_38 [0] : vector<128x32xf32> to vector<32xf32>
    %63 = vector.shape_cast %62 : vector<32xf32> to vector<1x32xf32>
    %cst_39 = arith.constant 1.280000e+02 : f32
    %64 = vector.broadcast %cst_39 : f32 to vector<1x32xf32>
    %65 = arith.divf %63, %64 : vector<1x32xf32>
    %66 = vector.broadcast %65 : vector<1x32xf32> to vector<128x32xf32>
    %67 = arith.subf %61, %66 : vector<128x32xf32>
    %68 = arith.mulf %67, %67 : vector<128x32xf32>
    %cst_40 = arith.constant dense<0.000000e+00> : vector<32xf32>
    %69 = vector.multi_reduction <add>, %68, %cst_40 [0] : vector<128x32xf32> to vector<32xf32>
    %70 = vector.shape_cast %69 : vector<32xf32> to vector<1x32xf32>
    %cst_41 = arith.constant 1.280000e+02 : f32
    %71 = vector.broadcast %cst_41 : f32 to vector<1x32xf32>
    %72 = arith.divf %70, %71 : vector<1x32xf32>
    %c0_42 = arith.constant 0 : index
    %c64 = arith.constant 64 : index
    %73 = vector.load %arg5[%c0_42, %c64] : memref<1x128xf32, #tpu.memory_space<vmem>>, vector<1x32xf32>
    %cst_43 = arith.constant 9.99999974E-6 : f32
    %74 = vector.broadcast %cst_43 : f32 to vector<1x32xf32>
    %75 = arith.addf %72, %74 : vector<1x32xf32>
    %76 = math.rsqrt %75 : vector<1x32xf32>
    %77 = arith.mulf %73, %76 : vector<1x32xf32>
    %78 = vector.broadcast %77 : vector<1x32xf32> to vector<128x32xf32>
    %79 = arith.mulf %67, %78 : vector<128x32xf32>
    %c0_44 = arith.constant 0 : index
    %c64_45 = arith.constant 64 : index
    %80 = vector.load %arg9[%c0_44, %c64_45] : memref<128x128xf32, #tpu.memory_space<vmem>>, vector<128x32xf32>
    tpu.vector_store %arg9[%c0_44, %c64_45], %79 {strides = array<i32>} : memref<128x128xf32, #tpu.memory_space<vmem>>, vector<128x32xf32>,
    %c2 = arith.constant 2 : index
    %c0_46 = arith.constant 0 : index
    %c0_47 = arith.constant 0 : index
    %81 = vector.load %arg3[%c2, %c0_46, %c0_47] : memref<3x32x32xf32, #tpu.memory_space<vmem>>, vector<1x32x32xf32>
    %82 = vector.shape_cast %81 : vector<1x32x32xf32> to vector<32x32xf32>
    %cst_48 = arith.constant dense<0.000000e+00> : vector<128x32xf32>
    %83 = tpu.matmul %61, %82, %cst_48 {dimension_numbers = #tpu.dot_dimension_numbers<[1], [0], [0], [1], [0, 0, 1, 1], [], []>} : vector<128x32xf32>, vector<32x32xf32>, vector<128x32xf32> -> vector<128x32xf32>
    %cst_49 = arith.constant dense<0.000000e+00> : vector<128x32xf32>
    %84 = tpu.matmul %1, %83, %cst_49 {dimension_numbers = #tpu.dot_dimension_numbers<[1], [0], [0], [1], [0, 0, 1, 1], [], []>} : vector<128x128xf32>, vector<128x32xf32>, vector<128x32xf32> -> vector<128x32xf32>
    %c2_50 = arith.constant 2 : index
    %c0_51 = arith.constant 0 : index
    %c0_52 = arith.constant 0 : index
    %85 = vector.load %arg4[%c2_50, %c0_51, %c0_52] : memref<3x1x32xf32, #tpu.memory_space<vmem>>, vector<1x1x32xf32>
    %86 = vector.shape_cast %85 : vector<1x1x32xf32> to vector<1x32xf32>
    %87 = vector.broadcast %86 : vector<1x32xf32> to vector<128x32xf32>
    %88 = arith.addf %84, %87 : vector<128x32xf32>
    %cst_53 = arith.constant 0.000000e+00 : f32
    %89 = vector.broadcast %cst_53 : f32 to vector<128x32xf32>
    %90 = arith.maximumf %88, %89 : vector<128x32xf32>
    %cst_54 = arith.constant dense<0.000000e+00> : vector<32xf32>
    %91 = vector.multi_reduction <add>, %90, %cst_54 [0] : vector<128x32xf32> to vector<32xf32>
    %92 = vector.shape_cast %91 : vector<32xf32> to vector<1x32xf32>
    %cst_55 = arith.constant 1.280000e+02 : f32
    %93 = vector.broadcast %cst_55 : f32 to vector<1x32xf32>
    %94 = arith.divf %92, %93 : vector<1x32xf32>
    %95 = vector.broadcast %94 : vector<1x32xf32> to vector<128x32xf32>
    %96 = arith.subf %90, %95 : vector<128x32xf32>
    %97 = arith.mulf %96, %96 : vector<128x32xf32>
    %cst_56 = arith.constant dense<0.000000e+00> : vector<32xf32>
    %98 = vector.multi_reduction <add>, %97, %cst_56 [0] : vector<128x32xf32> to vector<32xf32>
    %99 = vector.shape_cast %98 : vector<32xf32> to vector<1x32xf32>
    %cst_57 = arith.constant 1.280000e+02 : f32
    %100 = vector.broadcast %cst_57 : f32 to vector<1x32xf32>
    %101 = arith.divf %99, %100 : vector<1x32xf32>
    %c0_58 = arith.constant 0 : index
    %c96 = arith.constant 96 : index
    %102 = vector.load %arg5[%c0_58, %c96] : memref<1x128xf32, #tpu.memory_space<vmem>>, vector<1x32xf32>
    %cst_59 = arith.constant 9.99999974E-6 : f32
    %103 = vector.broadcast %cst_59 : f32 to vector<1x32xf32>
    %104 = arith.addf %101, %103 : vector<1x32xf32>
    %105 = math.rsqrt %104 : vector<1x32xf32>
    %106 = arith.mulf %102, %105 : vector<1x32xf32>
    %107 = vector.broadcast %106 : vector<1x32xf32> to vector<128x32xf32>
    %108 = arith.mulf %96, %107 : vector<128x32xf32>
    %c0_60 = arith.constant 0 : index
    %c96_61 = arith.constant 96 : index
    %109 = vector.load %arg9[%c0_60, %c96_61] : memref<128x128xf32, #tpu.memory_space<vmem>>, vector<128x32xf32>
    tpu.vector_store %arg9[%c0_60, %c96_61], %108 {strides = array<i32>} : memref<128x128xf32, #tpu.memory_space<vmem>>, vector<128x32xf32>,
    %c0_62 = arith.constant 0 : index
    %c0_63 = arith.constant 0 : index
    %110 = vector.load %arg9[%c0_62, %c0_63] : memref<128x128xf32, #tpu.memory_space<vmem>>, vector<128x128xf32>
    %c0_64 = arith.constant 0 : index
    %c0_65 = arith.constant 0 : index
    %111 = vector.load %arg6[%c0_64, %c0_65] : memref<128x32xf32, #tpu.memory_space<vmem>>, vector<128x32xf32>
    %cst_66 = arith.constant dense<0.000000e+00> : vector<128x32xf32>
    %112 = tpu.matmul %110, %111, %cst_66 {dimension_numbers = #tpu.dot_dimension_numbers<[1], [0], [0], [1], [0, 0, 1, 1], [], []>} : vector<128x128xf32>, vector<128x32xf32>, vector<128x32xf32> -> vector<128x32xf32>
    %c0_67 = arith.constant 0 : index
    %c0_68 = arith.constant 0 : index
    %113 = vector.load %arg7[%c0_67, %c0_68] : memref<1x32xf32, #tpu.memory_space<vmem>>, vector<1x32xf32>
    %114 = vector.broadcast %113 : vector<1x32xf32> to vector<128x32xf32>
    %115 = arith.addf %112, %114 : vector<128x32xf32>
    %c0_69 = arith.constant 0 : index
    %c0_70 = arith.constant 0 : index
    %c0_71 = arith.constant 0 : index
    %116 = vector.load %arg8[%c0_69, %c0_70, %c0_71] : memref<1x128x32xf32, #tpu.memory_space<vmem>>, vector<1x128x32xf32>
    %117 = vector.shape_cast %116 : vector<1x128x32xf32> to vector<128x32xf32>
    %118 = vector.shape_cast %115 : vector<128x32xf32> to vector<1x128x32xf32>
    tpu.vector_store %arg8[%c0_69, %c0_70, %c0_71], %118 {strides = array<i32>} : memref<1x128x32xf32, #tpu.memory_space<vmem>>, vector<1x128x32xf32>,
    return
  }
  func.func @transform_0(%arg0: i32) -> (i32, i32, i32) {
    %c0_i32 = arith.constant 0 : i32
    %c0_i32_0 = arith.constant 0 : i32
    %c0_i32_1 = arith.constant 0 : i32
    return %arg0, %c0_i32, %c0_i32_0 : i32, i32, i32
  }
  func.func @transform_1(%arg0: i32) -> (i32, i32, i32) {
    %c0_i32 = arith.constant 0 : i32
    %c0_i32_0 = arith.constant 0 : i32
    %c0_i32_1 = arith.constant 0 : i32
    return %arg0, %c0_i32, %c0_i32_0 : i32, i32, i32
  }
  func.func @transform_2(%arg0: i32) -> (i32, i32, i32) {
    %c0_i32 = arith.constant 0 : i32
    %c0_i32_0 = arith.constant 0 : i32
    %c0_i32_1 = arith.constant 0 : i32
    %c0_i32_2 = arith.constant 0 : i32
    return %c0_i32, %c0_i32_0, %c0_i32_1 : i32, i32, i32
  }
  func.func @transform_3(%arg0: i32) -> (i32, i32, i32) {
    %c0_i32 = arith.constant 0 : i32
    %c0_i32_0 = arith.constant 0 : i32
    %c0_i32_1 = arith.constant 0 : i32
    %c0_i32_2 = arith.constant 0 : i32
    return %c0_i32, %c0_i32_0, %c0_i32_1 : i32, i32, i32
  }
  func.func @transform_4(%arg0: i32) -> (i32, i32) {
    %c0_i32 = arith.constant 0 : i32
    %c0_i32_0 = arith.constant 0 : i32
    %c0_i32_1 = arith.constant 0 : i32
    return %c0_i32, %c0_i32_0 : i32, i32
  }
  func.func @transform_5(%arg0: i32) -> (i32, i32) {
    %c0_i32 = arith.constant 0 : i32
    %c0_i32_0 = arith.constant 0 : i32
    %c0_i32_1 = arith.constant 0 : i32
    return %c0_i32, %c0_i32_0 : i32, i32
  }
  func.func @transform_6(%arg0: i32) -> (i32, i32) {
    %c0_i32 = arith.constant 0 : i32
    %c0_i32_0 = arith.constant 0 : i32
    %c0_i32_1 = arith.constant 0 : i32
    return %c0_i32, %c0_i32_0 : i32, i32
  }
  func.func @transform_7(%arg0: i32) -> (i32, i32, i32) {
    %c0_i32 = arith.constant 0 : i32
    %c0_i32_0 = arith.constant 0 : i32
    %c0_i32_1 = arith.constant 0 : i32
    return %arg0, %c0_i32, %c0_i32_0 : i32, i32, i32
  }
}

</mosaic_0001>

<bundles_post_ra>
// kernel: tpu_custom_call.1
= control target key start
LH: loop header
LB: loop body
LE: loop exit
PB: predicated region body
PF: predicated region fallthrough
CT: control target
= control target key end

     0   :  { %s3259_s24 = smov 0   ;;  %s4560_s0 = inlined_call_operand.vmem [shape: f32[4,128,32], index: 0, kind: input, shape index: {}]   ;;  %s4561_s1 = inlined_call_operand.vmem [shape: f32[4,128,128], index: 1, kind: input, shape index: {}]   ;;  %s4562_s2 = inlined_call_operand.vmem [shape: f32[3,32,32], index: 2, kind: input, shape index: {}]   ;;  %s4563_s3 = inlined_call_operand.vmem [shape: f32[3,1,32], index: 3, kind: input, shape index: {}]   ;;  %s4564_s4 = inlined_call_operand.vmem [shape: f32[1,128], index: 4, kind: input, shape index: {}]   ;;  %s4565_s5 = inlined_call_operand.vmem [shape: f32[128,32], index: 5, kind: input, shape index: {}]   ;;  %s4566_s6 = inlined_call_operand.vmem [shape: f32[1,32], index: 6, kind: input, shape index: {}]   ;;  %s4567_s7 = inlined_call_operand.vmem [shape: f32[4,128,32], index: 7, kind: output, shape index: {}]  }
   0x1 LB: > { %s2554_s25 = sadd.s32 4294967295, %s3213_s24   ;;  %p2558_p0 = scmp.ge.s32.totalorder %s3213_s24, 1  ;;  %s3213_s24 = sphi %s3259_s24, %s17_s24  }
   0x2   : > { %p247_p1 = scmp.lt.s32.totalorder %s3213_s24, 5 }
   0x4   : > { %p248_p2 = pnand %p2558_p0, %p247_p1 }
   0x6   : > { %251 = sbr.rel (%p248_p2) target bundleno = 2089 (0x829), region = 48 }
   0xb   : > { %v486_v0 = vld [vmem:[%s4562_s2 + $0x18] sm:$0xff]  ;;  %v485_v1 = vld [vmem:[%s4562_s2 + $0x10] sm:$0xff]  ;;  %p284_p3 = scmp.lt.s32.totalorder %s2554_s25, 3  ;;  %v484_v2 = vld [vmem:[%s4562_s2 + $0x8] sm:$0xff]  ;;  %vm331_vm0 = vcmask 261120   ;;  %s3216_s29 = smov 32  }
   0xc   : > { %2820 = vmatprep.subr.mxu0 %v486_v0  ;;  %v483_v3 = vld [vmem:[%s4562_s2] sm:$0xff]  ;;  %s3217_s19 = smov 64   ;;  %s3218_s26 = smov 96   ;;  %vm1066_vm1 = vcmask 523520   ;;  %vm1668_vm2 = vcmask 785920   ;;  %vm2270_vm3 = vcmask 1048320  }
   0xd   : > { %2821 = vmatpush3.msra.mxu0 %v486_v0  ;;  %s4659_s25 = smov (!%p284_p3, %s2554_s25), 3 }
   0xe   : > { %2822 = vmatprep.subr.mxu0 %v485_v1  ;;  %s3279_s11 = sshll.u32 %s4659_s25, 7 }
   0xf   : > { %2823 = vmatpush3.msra.mxu0 %v485_v1  ;;  %s3285_s14 = scalar_lea.vmem %s4560_s0, %s3279_s11  ;;  %s3396_s17 = scalar_lea.vmem %s4561_s1, %s3279_s11 }
  0x10   : > { %2824 = vmatprep.subr.mxu0 %v484_v2  ;;  %v3288_v4 = vld [vmem:[%s3285_s14] sm:$0xff]  ;;  %v3291_v5 = vld [vmem:[%s3285_s14 + $0x8] sm:$0xff]  ;;  %v3294_v6 = vld [vmem:[%s3285_s14 + $0x10] sm:$0xff]  ;;  %s4523_s27 = scalar_lea.vmem %s4567_s7, %s3279_s11 }
  0x11   : > { %2825 = vmatpush3.msra.mxu0 %v484_v2  ;;  %v332_v7 = vsel %vm331_vm0, %v3288_v4, 0.0  ;;  %v333_v8 = vsel %vm331_vm0, %v3291_v5, 0.0  ;;  %v335_v9 = vsel %vm331_vm0, %v3294_v6, 0.0  ;;  %2828 = vmatprep.mubr.msk.f32.mxu0 %vm331_vm0, %v3288_v4  ;;  %v3305_v10 = vld [vmem:[%s3285_s14 + $0x18] sm:$0xff]  ;;  %v3312_v13 = vld [vmem:[%s3285_s14 + $0x20] sm:$0xff]  ;;  %v320_v16 = vld [vmem:[%s3285_s14 + $0x28] sm:$0xff] }
  0x12   : > { %2826 = vmatprep.subr.mxu0 %v483_v3  ;;  %v334_v11 = vadd.f32 %v333_v8, %v332_v7  ;;  %v337_v12 = vsel %vm331_vm0, %v3305_v10, 0.0  ;;  %v339_v15 = vsel %vm331_vm0, %v3312_v13, 0.0  ;;  %v341_v18 = vsel %vm331_vm0, %v320_v16, 0.0  ;;  %v321_v19 = vld [vmem:[%s3285_s14 + $0x30] sm:$0xff]  ;;  %v322_v22 = vld [vmem:[%s3285_s14 + $0x38] sm:$0xff]  ;;  %v323_v25 = vld [vmem:[%s3285_s14 + $0x40] sm:$0xff] }
  0x13   : > { %2827 = vmatpush3.msra.mxu0 %v483_v3  ;;  %v343_v21 = vsel %vm331_vm0, %v321_v19, 0.0  ;;  %v345_v24 = vsel %vm331_vm0, %v322_v22, 0.0  ;;  %v347_v27 = vsel %vm331_vm0, %v323_v25, 0.0  ;;  %v324_v28 = vld [vmem:[%s3285_s14 + $0x48] sm:$0xff]  ;;  %v325_v31 = vld [vmem:[%s3285_s14 + $0x50] sm:$0xff]  ;;  %v326_v34 = vld [vmem:[%s3285_s14 + $0x58] sm:$0xff] }
  0x14   : > { %2829 = vmatmul.mubr.msk.f32.vlgmr.msra.gmra.mxu0 %vm331_vm0, %v3291_v5  ;;  %v336_v14 = vadd.f32 %v335_v9, %v334_v11  ;;  %v349_v30 = vsel %vm331_vm0, %v324_v28, 0.0  ;;  %v351_v33 = vsel %vm331_vm0, %v325_v31, 0.0  ;;  %v353_v36 = vsel %vm331_vm0, %v326_v34, 0.0  ;;  %v327_v37 = vld [vmem:[%s3285_s14 + $0x60] sm:$0xff]  ;;  %v328_v40 = vld [vmem:[%s3285_s14 + $0x68] sm:$0xff]  ;;  %v329_v43 = vld [vmem:[%s3285_s14 + $0x70] sm:$0xff] }
  0x15   : > { %2831 = vmatprep.mubr.msk.f32.mxu0 %vm331_vm0, %v3294_v6  ;;  %v355_v39 = vsel %vm331_vm0, %v327_v37, 0.0  ;;  %v357_v42 = vsel %vm331_vm0, %v328_v40, 0.0  ;;  %v359_v45 = vsel %vm331_vm0, %v329_v43, 0.0  ;;  %v330_v46 = vld [vmem:[%s3285_s14 + $0x78] sm:$0xff] }
  0x16   : > { %v338_v17 = vadd.f32 %v337_v12, %v336_v14  ;;  %v361_v48 = vsel %vm331_vm0, %v330_v46, 0.0  ;;  %v2585_v11 = vld [vmem:[%s4562_s2 + $0x38] sm:$0xff]  ;;  %v2584_v12 = vld [vmem:[%s4562_s2 + $0x30] sm:$0xff] }
  0x17   : > { %2908 = vmatprep.subr.mxu0 %v2585_v11 }
  0x18   : > { %2832 = vmatmul.mubr.msk.f32.gmra.mxu0 %vm331_vm0, %v3305_v10  ;;  %v340_v20 = vadd.f32 %v339_v15, %v338_v17 }
  0x19   : > { %2834 = vmatprep.mubr.msk.f32.mxu0 %vm331_vm0, %v3312_v13  ;;  %2909 = vmatpush3.msra.mxu0 %v2585_v11 }
  0x1a   : > { %v342_v23 = vadd.f32 %v341_v18, %v340_v20  ;;  %2910 = vmatprep.subr.mxu0 %v2584_v12 }
  0x1b   : > { %2911 = vmatpush3.msra.mxu0 %v2584_v12 }
  0x1c   : > { %2835 = vmatmul.mubr.msk.f32.gmra.mxu0 %vm331_vm0, %v320_v16  ;;  %v344_v26 = vadd.f32 %v343_v21, %v342_v23 }
  0x1d   : > { %2837 = vmatprep.mubr.msk.f32.mxu0 %vm331_vm0, %v321_v19 }
  0x1e   : > { %v346_v29 = vadd.f32 %v345_v24, %v344_v26 }
  0x20   : > { %2838 = vmatmul.mubr.msk.f32.gmra.mxu0 %vm331_vm0, %v322_v22  ;;  %v348_v32 = vadd.f32 %v347_v27, %v346_v29 }
  0x21   : > { %2840 = vmatprep.mubr.msk.f32.mxu0 %vm331_vm0, %v323_v25 }
  0x22   : > { %v350_v35 = vadd.f32 %v349_v30, %v348_v32  ;;  %v3412_v30 = vld [vmem:[%s3396_s17 + $0x8] sm:$0xff]  ;;  %v3420_v32 = vld [vmem:[%s3396_s17 + $0x18] sm:$0xff] }
  0x24   : > { %2841 = vmatmul.mubr.msk.f32.gmra.mxu0 %vm331_vm0, %v324_v28  ;;  %v352_v38 = vadd.f32 %v351_v33, %v350_v35  ;;  %v3423_v33 = vld [vmem:[%s3396_s17 + $0x20] sm:$0xff]  ;;  %v3431_v35 = vld [vmem:[%s3396_s17 + $0x30] sm:$0xff] }
  0x25   : > { %2843 = vmatprep.mubr.msk.f32.mxu0 %vm331_vm0, %v325_v31 }
  0x26   : > { %v354_v41 = vadd.f32 %v353_v36, %v352_v38  ;;  %v3436_v36 = vld [vmem:[%s3396_s17 + $0x38] sm:$0xff]  ;;  %v3444_v38 = vld [vmem:[%s3396_s17 + $0x48] sm:$0xff] }
  0x28   : > { %2844 = vmatmul.mubr.msk.f32.gmra.mxu0 %vm331_vm0, %v326_v34  ;;  %v356_v44 = vadd.f32 %v355_v39, %v354_v41  ;;  %v3447_v39 = vld [vmem:[%s3396_s17 + $0x50] sm:$0xff]  ;;  %v3455_v41 = vld [vmem:[%s3396_s17 + $0x60] sm:$0xff] }
  0x29   : > { %2846 = vmatprep.mubr.msk.f32.mxu0 %vm331_vm0, %v327_v37 }
  0x2a   : > { %v358_v47 = vadd.f32 %v357_v42, %v356_v44  ;;  %v3460_v42 = vld [vmem:[%s3396_s17 + $0x68] sm:$0xff]  ;;  %v3468_v44 = vld [vmem:[%s3396_s17 + $0x78] sm:$0xff] }
  0x2c   : > { %2847 = vmatmul.mubr.msk.f32.gmra.mxu0 %vm331_vm0, %v328_v40  ;;  %v360_v49 = vadd.f32 %v359_v45, %v358_v47  ;;  %v2582_v45 = vld [vmem:[%s4562_s2 + $0x20] sm:$0xff] }
  0x2d   : > { %2849 = vmatprep.mubr.msk.f32.mxu0 %vm331_vm0, %v329_v43 }
  0x2e   : > { %v362_v50 = vadd.f32 %v361_v48, %v360_v49 }
  0x30   : > { %2850 = vmatmul.mubr.msk.f32.gmra.mxu0 %vm331_vm0, %v330_v46  ;;  %v363_v51 = vrot.slane %v362_v50, 4 }
  0x32   : > { %v364_v52 = vadd.f32 %v363_v51, %v362_v50 }
  0x34   : > { %v365_v53 = vrot.slane %v364_v52, 2 }
  0x36   : > { %v366_v54 = vadd.f32 %v365_v53, %v364_v52 }
  0x38   : > { %v367_v55 = vrot.slane %v366_v54, 1 }
  0x3a   : > { %v368_v56 = vadd.f32 %v367_v55, %v366_v54 }
  0x3c   : > { %v370_v57 = vmul.f32 0.0078125, %v368_v56 }
  0x3e   : > { %v3356_v58 = vsub.f32 %v3288_v4, %v370_v57  ;;  %v3359_v59 = vsub.f32 %v3291_v5, %v370_v57  ;;  %v3362_v60 = vsub.f32 %v3294_v6, %v370_v57  ;;  %v3365_v61 = vsub.f32 %v3305_v10, %v370_v57  ;;  %v3399_v10 = vld [vmem:[%s3396_s17] sm:$0xff] }
  0x3f   : > { %v3368_v62 = vsub.f32 %v3312_v13, %v370_v57  ;;  %v3370_v63 = vsub.f32 %v320_v16, %v370_v57  ;;  %v3372_v0 = vsub.f32 %v321_v19, %v370_v57  ;;  %v3374_v1 = vsub.f32 %v322_v22, %v370_v57  ;;  %2884 = vmatprep.mubr.f32.mxu1 %v3399_v10  ;;  %v2583_v13 = vld [vmem:[%s4562_s2 + $0x28] sm:$0xff] }
  0x40   : > { %v3376_v2 = vsub.f32 %v323_v25, %v370_v57  ;;  %v3378_v3 = vsub.f32 %v324_v28, %v370_v57  ;;  %v3380_v4 = vsub.f32 %v325_v31, %v370_v57  ;;  %v3382_v5 = vsub.f32 %v326_v34, %v370_v57  ;;  %2912 = vmatprep.subr.mxu0 %v2583_v13  ;;  %v3415_v31 = vld [vmem:[%s3396_s17 + $0x10] sm:$0xff]  ;;  %v3428_v34 = vld [vmem:[%s3396_s17 + $0x28] sm:$0xff] }
  0x41   : > { %v3384_v6 = vsub.f32 %v327_v37, %v370_v57  ;;  %v3386_v7 = vsub.f32 %v328_v40, %v370_v57  ;;  %v3388_v8 = vsub.f32 %v329_v43, %v370_v57  ;;  %v3390_v9 = vsub.f32 %v330_v46, %v370_v57  ;;  %2913 = vmatpush3.msra.mxu0 %v2583_v13  ;;  %v3439_v37 = vld [vmem:[%s3396_s17 + $0x40] sm:$0xff]  ;;  %v3452_v40 = vld [vmem:[%s3396_s17 + $0x58] sm:$0xff]  ;;  %v3463_v43 = vld [vmem:[%s3396_s17 + $0x70] sm:$0xff] }
  0x42   : > { %2914 = vmatprep.subr.mxu0 %v2582_v45  ;;  %v3478_v46 = vld [vmem:[%s4563_s3] ss:$0 sm:$0xff] }
  0x43   : > { %2915 = vmatpush3.msra.mxu0 %v2582_v45 }
  0xd4   : > { %v2830_v14 = vpop.f32.mrf.mxu0 }
  0xd6   : > { %v601_v15 = vpop.f32.mrf.mxu0 }
  0xd8   : > { %v2833_v16 = vpop.f32.mrf.mxu0 }
  0xda   : > { %v611_v17 = vpop.f32.mrf.mxu0 }
  0xdc   : > { %v2836_v18 = vpop.f32.mrf.mxu0 }
  0xde   : > { %v621_v19 = vpop.f32.mrf.mxu0 }
  0xe0   : > { %v2839_v20 = vpop.f32.mrf.mxu0 }
  0xe2   : > { %v631_v21 = vpop.f32.mrf.mxu0 }
  0xe4   : > { %v2842_v22 = vpop.f32.mrf.mxu0 }
  0xe6   : > { %v641_v23 = vpop.f32.mrf.mxu0 }
  0xe8   : > { %v2845_v24 = vpop.f32.mrf.mxu0 }
  0xea   : > { %v651_v25 = vpop.f32.mrf.mxu0 }
  0xec   : > { %v2848_v26 = vpop.f32.mrf.mxu0 }
  0xee   : > { %v661_v27 = vpop.f32.mrf.mxu0 }
  0xf0   : > { %v2851_v28 = vpop.f32.mrf.mxu0 }
  0xf1   : > { %2852 = vmatprep.subr.mxu1 %v2851_v28 }
  0xf2   : > { %v671_v29 = vpop.f32.mrf.mxu0  ;;  %2853 = vmatpush3.msra.mxu1 %v2851_v28 }
  0xf3   : > { %2854 = vmatprep.subr.mxu1 %v671_v29 }
  0xf4   : > { %2855 = vmatpush3.msra.mxu1 %v671_v29 }
  0xf5   : > { %2856 = vmatprep.subr.mxu1 %v2848_v26 }
  0xf6   : > { %2857 = vmatpush3.msra.mxu1 %v2848_v26 }
  0xf7   : > { %2858 = vmatprep.subr.mxu1 %v661_v27 }
  0xf8   : > { %2859 = vmatpush3.msra.mxu1 %v661_v27 }
  0xf9   : > { %2860 = vmatprep.subr.mxu1 %v2845_v24 }
  0xfa   : > { %2861 = vmatpush3.msra.mxu1 %v2845_v24 }
  0xfb   : > { %2862 = vmatprep.subr.mxu1 %v651_v25 }
  0xfc   : > { %2863 = vmatpush3.msra.mxu1 %v651_v25 }
  0xfd   : > { %2864 = vmatprep.subr.mxu1 %v2842_v22 }
  0xfe   : > { %2865 = vmatpush3.msra.mxu1 %v2842_v22 }
  0xff   : > { %2866 = vmatprep.subr.mxu1 %v641_v23 }
 0x100   : > { %2867 = vmatpush3.msra.mxu1 %v641_v23 }
 0x101   : > { %2868 = vmatprep.subr.mxu1 %v2839_v20 }
 0x102   : > { %2869 = vmatpush3.msra.mxu1 %v2839_v20 }
 0x103   : > { %2870 = vmatprep.subr.mxu1 %v631_v21 }
 0x104   : > { %2871 = vmatpush3.msra.mxu1 %v631_v21 }
 0x105   : > { %2872 = vmatprep.subr.mxu1 %v2836_v18 }
 0x106   : > { %2873 = vmatpush3.msra.mxu1 %v2836_v18 }
 0x107   : > { %2874 = vmatprep.subr.mxu1 %v621_v19 }
 0x108   : > { %2875 = vmatpush3.msra.mxu1 %v621_v19 }
 0x109   : > { %2876 = vmatprep.subr.mxu1 %v2833_v16 }
 0x10a   : > { %2877 = vmatpush3.msra.mxu1 %v2833_v16 }
 0x10b   : > { %2878 = vmatprep.subr.mxu1 %v611_v17 }
 0x10c   : > { %2879 = vmatpush3.msra.mxu1 %v611_v17 }
 0x10d   : > { %2880 = vmatprep.subr.mxu1 %v2830_v14 }
 0x10e   : > { %2881 = vmatpush3.msra.mxu1 %v2830_v14 }
 0x10f   : > { %2882 = vmatprep.subr.mxu1 %v601_v15 }
 0x110   : > { %2883 = vmatpush3.msra.mxu1 %v601_v15 }
 0x111   : > { %2885 = vmatmul.mubr.f32.vlgmr.msra.gmra.mxu1 %v3412_v30 }
 0x112   : > { %2887 = vmatprep.mubr.f32.mxu1 %v3415_v31 }
 0x115   : > { %2888 = vmatmul.mubr.f32.gmra.mxu1 %v3420_v32 }
 0x116   : > { %2890 = vmatprep.mubr.f32.mxu1 %v3423_v33 }
 0x119   : > { %2891 = vmatmul.mubr.f32.gmra.mxu1 %v3428_v34 }
 0x11a   : > { %2893 = vmatprep.mubr.f32.mxu1 %v3431_v35 }
 0x11d   : > { %2894 = vmatmul.mubr.f32.gmra.mxu1 %v3436_v36 }
 0x11e   : > { %2896 = vmatprep.mubr.f32.mxu1 %v3439_v37 }
 0x121   : > { %2897 = vmatmul.mubr.f32.gmra.mxu1 %v3444_v38 }
 0x122   : > { %2899 = vmatprep.mubr.f32.mxu1 %v3447_v39 }
 0x125   : > { %2900 = vmatmul.mubr.f32.gmra.mxu1 %v3452_v40 }
 0x126   : > { %2902 = vmatprep.mubr.f32.mxu1 %v3455_v41 }
 0x129   : > { %2903 = vmatmul.mubr.f32.gmra.mxu1 %v3460_v42 }
 0x12a   : > { %2905 = vmatprep.mubr.f32.mxu1 %v3463_v43 }
 0x12d   : > { %2906 = vmatmul.mubr.f32.gmra.mxu1 %v3468_v44 }
 0x12e   : > { %2972 = vmatprep.mubr.f32.mxu1 %v3399_v10 }
 0x1d1   : > { %v2886_v47 = vpop.f32.mrf.mxu1 }
 0x1d2   : > { %v759_v48 = vadd.f32 %v2886_v47, %v3478_v46 }
 0x1d3   : > { %v753_v49 = vpop.f32.mrf.mxu1 }
 0x1d4   : > { %v754_v50 = vadd.f32 %v3478_v46, %v753_v49  ;;  %v3482_v52 = vmax.f32 %v759_v48, 0.0 }
 0x1d5   : > { %v2889_v51 = vpop.f32.mrf.mxu1 }
 0x1d6   : > { %v3484_v53 = vmax.f32 %v754_v50, 0.0  ;;  %v769_v54 = vadd.f32 %v2889_v51, %v3478_v46  ;;  %v849_v12 = vsel %vm331_vm0, %v3482_v52, 0.0 }
 0x1d7   : > { %v763_v55 = vpop.f32.mrf.mxu1 }
 0x1d8   : > { %v848_v56 = vsel %vm331_vm0, %v3484_v53, 0.0  ;;  %v764_v57 = vadd.f32 %v3478_v46, %v763_v55  ;;  %2916 = vmatprep.mubr.msk.f32.mxu0 %vm331_vm0, %v3484_v53  ;;  %v3496_v13 = vmax.f32 %v769_v54, 0.0 }
 0x1d9   : > { %v2892_v11 = vpop.f32.mrf.mxu1  ;;  %2917 = vmatmul.mubr.msk.f32.vlgmr.msra.gmra.mxu0 %vm331_vm0, %v3482_v52  ;;  %v850_v16 = vadd.f32 %v849_v12, %v848_v56 }
 0x1da   : > { %v3498_v14 = vmax.f32 %v764_v57, 0.0  ;;  %v779_v15 = vadd.f32 %v2892_v11, %v3478_v46  ;;  %v853_v22 = vsel %vm331_vm0, %v3496_v13, 0.0 }
 0x1db   : > { %v773_v17 = vpop.f32.mrf.mxu1 }
 0x1dc   : > { %v851_v18 = vsel %vm331_vm0, %v3498_v14, 0.0  ;;  %v774_v19 = vadd.f32 %v3478_v46, %v773_v17  ;;  %2919 = vmatprep.mubr.msk.f32.mxu0 %vm331_vm0, %v3498_v14  ;;  %v3510_v23 = vmax.f32 %v779_v15, 0.0 }
 0x1dd   : > { %v852_v20 = vadd.f32 %v851_v18, %v850_v16  ;;  %v2895_v21 = vpop.f32.mrf.mxu1  ;;  %2920 = vmatmul.mubr.msk.f32.gmra.mxu0 %vm331_vm0, %v3496_v13 }
 0x1de   : > { %v3512_v24 = vmax.f32 %v774_v19, 0.0  ;;  %v789_v25 = vadd.f32 %v2895_v21, %v3478_v46  ;;  %v857_v48 = vsel %vm331_vm0, %v3510_v23, 0.0 }
 0x1df   : > { %v854_v26 = vadd.f32 %v853_v22, %v852_v20  ;;  %v783_v27 = vpop.f32.mrf.mxu1 }
 0x1e0   : > { %v855_v28 = vsel %vm331_vm0, %v3512_v24, 0.0  ;;  %v784_v29 = vadd.f32 %v3478_v46, %v783_v27  ;;  %2922 = vmatprep.mubr.msk.f32.mxu0 %vm331_vm0, %v3512_v24  ;;  %v3524_v49 = vmax.f32 %v789_v25, 0.0 }
 0x1e1   : > { %v856_v45 = vadd.f32 %v855_v28, %v854_v26  ;;  %v2898_v47 = vpop.f32.mrf.mxu1  ;;  %2923 = vmatmul.mubr.msk.f32.gmra.mxu0 %vm331_vm0, %v3510_v23 }
 0x1e2   : > { %v3526_v50 = vmax.f32 %v784_v29, 0.0  ;;  %v799_v51 = vadd.f32 %v2898_v47, %v3478_v46  ;;  %v861_v15 = vsel %vm331_vm0, %v3524_v49, 0.0 }
 0x1e3   : > { %v858_v54 = vadd.f32 %v857_v48, %v856_v45  ;;  %v793_v55 = vpop.f32.mrf.mxu1 }
 0x1e4   : > { %v859_v56 = vsel %vm331_vm0, %v3526_v50, 0.0  ;;  %v794_v57 = vadd.f32 %v3478_v46, %v793_v55  ;;  %2925 = vmatprep.mubr.msk.f32.mxu0 %vm331_vm0, %v3526_v50  ;;  %v3538_v16 = vmax.f32 %v799_v51, 0.0 }
 0x1e5   : > { %v860_v11 = vadd.f32 %v859_v56, %v858_v54  ;;  %v2901_v12 = vpop.f32.mrf.mxu1  ;;  %2926 = vmatmul.mubr.msk.f32.gmra.mxu0 %vm331_vm0, %v3524_v49 }
 0x1e6   : > { %v3540_v17 = vmax.f32 %v794_v57, 0.0  ;;  %v809_v18 = vadd.f32 %v2901_v12, %v3478_v46  ;;  %v865_v27 = vsel %vm331_vm0, %v3538_v16, 0.0 }
 0x1e7   : > { %v862_v19 = vadd.f32 %v861_v15, %v860_v11  ;;  %v803_v20 = vpop.f32.mrf.mxu1 }
 0x1e8   : > { %v863_v21 = vsel %vm331_vm0, %v3540_v17, 0.0  ;;  %v804_v22 = vadd.f32 %v3478_v46, %v803_v20  ;;  %2928 = vmatprep.mubr.msk.f32.mxu0 %vm331_vm0, %v3540_v17  ;;  %v3552_v28 = vmax.f32 %v809_v18, 0.0 }
 0x1e9   : > { %v864_v25 = vadd.f32 %v863_v21, %v862_v19  ;;  %v2904_v26 = vpop.f32.mrf.mxu1  ;;  %2929 = vmatmul.mubr.msk.f32.gmra.mxu0 %vm331_vm0, %v3538_v16 }
 0x1ea   : > { %v3554_v29 = vmax.f32 %v804_v22, 0.0  ;;  %v819_v45 = vadd.f32 %v2904_v26, %v3478_v46  ;;  %v869_v57 = vsel %vm331_vm0, %v3552_v28, 0.0 }
 0x1eb   : > { %v866_v47 = vadd.f32 %v865_v27, %v864_v25  ;;  %v813_v48 = vpop.f32.mrf.mxu1 }
 0x1ec   : > { %v867_v51 = vsel %vm331_vm0, %v3554_v29, 0.0  ;;  %v814_v54 = vadd.f32 %v3478_v46, %v813_v48  ;;  %2931 = vmatprep.mubr.msk.f32.mxu0 %vm331_vm0, %v3554_v29  ;;  %v3566_v11 = vmax.f32 %v819_v45, 0.0 }
 0x1ed   : > { %v868_v55 = vadd.f32 %v867_v51, %v866_v47  ;;  %v2907_v56 = vpop.f32.mrf.mxu1  ;;  %2932 = vmatmul.mubr.msk.f32.gmra.mxu0 %vm331_vm0, %v3552_v28 }
 0x1ee   : > { %v3568_v12 = vmax.f32 %v814_v54, 0.0  ;;  %v829_v15 = vadd.f32 %v2907_v56, %v3478_v46  ;;  %v873_v25 = vsel %vm331_vm0, %v3566_v11, 0.0 }
 0x1ef   : > { %v870_v18 = vadd.f32 %v869_v57, %v868_v55  ;;  %v823_v19 = vpop.f32.mrf.mxu1 }
 0x1f0   : > { %v871_v20 = vsel %vm331_vm0, %v3568_v12, 0.0  ;;  %v824_v21 = vadd.f32 %v3478_v46, %v823_v19  ;;  %2934 = vmatprep.mubr.msk.f32.mxu0 %vm331_vm0, %v3568_v12  ;;  %v3580_v26 = vmax.f32 %v829_v15, 0.0 }
 0x1f1   : > { %v872_v22 = vadd.f32 %v871_v20, %v870_v18  ;;  %2935 = vmatmul.mubr.msk.f32.gmra.mxu0 %vm331_vm0, %v3566_v11 }
 0x1f2   : > { %v846_v27 = vmax.f32 %v824_v21, 0.0  ;;  %v877_v46 = vsel %vm331_vm0, %v3580_v26, 0.0 }
 0x1f3   : > { %v874_v45 = vadd.f32 %v873_v25, %v872_v22 }
 0x1f4   : > { %v875_v47 = vsel %vm331_vm0, %v846_v27, 0.0  ;;  %2937 = vmatprep.mubr.msk.f32.mxu0 %vm331_vm0, %v846_v27 }
 0x1f5   : > { %v876_v48 = vadd.f32 %v875_v47, %v874_v45  ;;  %2938 = vmatmul.mubr.msk.f32.gmra.mxu0 %vm331_vm0, %v3580_v26 }
 0x1f7   : > { %v878_v51 = vadd.f32 %v877_v46, %v876_v48 }
 0x1f9   : > { %v879_v54 = vrot.slane %v878_v51, 4 }
 0x1fb   : > { %v880_v55 = vadd.f32 %v879_v54, %v878_v51 }
 0x1fd   : > { %v881_v56 = vrot.slane %v880_v55, 2 }
 0x1ff   : > { %v882_v57 = vadd.f32 %v881_v56, %v880_v55 }
 0x201   : > { %v883_v15 = vrot.slane %v882_v57, 1 }
 0x203   : > { %v884_v18 = vadd.f32 %v883_v15, %v882_v57 }
 0x205   : > { %v885_v19 = vmul.f32 0.0078125, %v884_v18 }
 0x207   : > { %v3589_v20 = vsub.f32 %v3484_v53, %v885_v19  ;;  %v3592_v21 = vsub.f32 %v3482_v52, %v885_v19  ;;  %v3595_v22 = vsub.f32 %v3498_v14, %v885_v19  ;;  %v3598_v25 = vsub.f32 %v3496_v13, %v885_v19 }
 0x208   : > { %v3605_v48 = vsub.f32 %v3512_v24, %v885_v19  ;;  %v3610_v52 = vsub.f32 %v3510_v23, %v885_v19  ;;  %v3617_v54 = vsub.f32 %v3526_v50, %v885_v19  ;;  %v3623_v23 = vsub.f32 %v3524_v49, %v885_v19 }
 0x209   : > { %v902_v45 = vmul.f32 %v3589_v20, %v3589_v20  ;;  %v903_v47 = vmul.f32 %v3592_v21, %v3592_v21  ;;  %v904_v53 = vmul.f32 %v3595_v22, %v3595_v22  ;;  %v905_v14 = vmul.f32 %v3598_v25, %v3598_v25 }
 0x20a   : > { %4602 = vst [vmem:[#allocation3_spill] sm:$0xff] %v3617_v54  ;;  %v906_v24 = vmul.f32 %v3605_v48, %v3605_v48  ;;  %4603 = vst [vmem:[#allocation4_spill] sm:$0xff] %v3623_v23  ;;  %v907_v57 = vmul.f32 %v3610_v52, %v3610_v52  ;;  %v908_v50 = vmul.f32 %v3617_v54, %v3617_v54 }
 0x20b   : > { %v918_v13 = vsel %vm331_vm0, %v902_v45, 0.0  ;;  %v919_v46 = vsel %vm331_vm0, %v903_v47, 0.0  ;;  %v921_v55 = vsel %vm331_vm0, %v904_v53, 0.0  ;;  %v923_v15 = vsel %vm331_vm0, %v905_v14, 0.0 }
 0x20c   : > { %v920_v51 = vadd.f32 %v919_v46, %v918_v13  ;;  %v3629_v45 = vsub.f32 %v3540_v17, %v885_v19  ;;  %v925_v47 = vsel %vm331_vm0, %v906_v24, 0.0  ;;  %v3635_v53 = vsub.f32 %v3538_v16, %v885_v19 }
 0x20d   : > { %v909_v49 = vmul.f32 %v3623_v23, %v3623_v23  ;;  %v927_v46 = vsel %vm331_vm0, %v907_v57, 0.0  ;;  %v3641_v14 = vsub.f32 %v3554_v29, %v885_v19  ;;  %v3647_v24 = vsub.f32 %v3552_v28, %v885_v19 }
 0x20e   : > { %v922_v56 = vadd.f32 %v921_v55, %v920_v51  ;;  %4604 = vst [vmem:[#allocation5_spill] sm:$0xff] %v3629_v45  ;;  %4605 = vst [vmem:[#allocation6_spill] sm:$0xff] %v3635_v53  ;;  %v910_v17 = vmul.f32 %v3629_v45, %v3629_v45  ;;  %v929_v55 = vsel %vm331_vm0, %v908_v50, 0.0  ;;  %v911_v16 = vmul.f32 %v3635_v53, %v3635_v53 }
 0x20f   : > { %4606 = vst [vmem:[#allocation7_spill] sm:$0xff] %v3641_v14  ;;  %4607 = vst [vmem:[#allocation8_spill] sm:$0xff] %v3647_v24  ;;  %v3653_v57 = vsub.f32 %v3568_v12, %v885_v19  ;;  %v912_v29 = vmul.f32 %v3641_v14, %v3641_v14  ;;  %v3659_v50 = vsub.f32 %v3566_v11, %v885_v19 }
 0x210   : > { %v924_v18 = vadd.f32 %v923_v15, %v922_v56  ;;  %v931_v15 = vsel %vm331_vm0, %v909_v49, 0.0  ;;  %v913_v28 = vmul.f32 %v3647_v24, %v3647_v24  ;;  %v3664_v49 = vsub.f32 %v846_v27, %v885_v19 }
 0x211   : > { %4608 = vst [vmem:[#allocation9_spill] sm:$0xff] %v3653_v57  ;;  %4609 = vst [vmem:[#allocation10_spill] sm:$0xff] %v3659_v50  ;;  %v914_v12 = vmul.f32 %v3653_v57, %v3653_v57  ;;  %v915_v11 = vmul.f32 %v3659_v50, %v3659_v50 }
 0x212   : > { %v926_v13 = vadd.f32 %v925_v47, %v924_v18  ;;  %v933_v47 = vsel %vm331_vm0, %v910_v17, 0.0  ;;  %4610 = vst [vmem:[#allocation11_spill] sm:$0xff] %v3664_v49  ;;  %v3670_v17 = vsub.f32 %v3580_v26, %v885_v19 }
 0x213   : > { %v941_v27 = vsel %vm331_vm0, %v914_v12, 0.0 }
 0x214   : > { %v928_v51 = vadd.f32 %v927_v46, %v926_v13  ;;  %v935_v46 = vsel %vm331_vm0, %v911_v16, 0.0  ;;  %4611 = vst [vmem:[#allocation12_spill] sm:$0xff] %v3670_v17  ;;  %v916_v16 = vmul.f32 %v3664_v49, %v3664_v49 }
 0x216   : > { %v930_v56 = vadd.f32 %v929_v55, %v928_v51  ;;  %v937_v55 = vsel %vm331_vm0, %v912_v29, 0.0  ;;  %v943_v29 = vsel %vm331_vm0, %v915_v11, 0.0  ;;  %v945_v26 = vsel %vm331_vm0, %v916_v16, 0.0 }
 0x218   : > { %v932_v18 = vadd.f32 %v931_v15, %v930_v56  ;;  %v939_v15 = vsel %vm331_vm0, %v913_v28, 0.0 }
 0x21a   : > { %v934_v13 = vadd.f32 %v933_v47, %v932_v18 }
 0x21c   : > { %v936_v51 = vadd.f32 %v935_v46, %v934_v13  ;;  %v917_v13 = vmul.f32 %v3670_v17, %v3670_v17  ;;  %v3215_v17 = vmov 1966171168  }
 0x21d   : > { %v961_v24 = vunpack.c.l.s4 %v3215_v17 }
 0x21e   : > { %v938_v56 = vadd.f32 %v937_v55, %v936_v51  ;;  %v947_v51 = vsel %vm331_vm0, %v917_v13, 0.0 }
 0x220   : > { %v940_v18 = vadd.f32 %v939_v15, %v938_v56 }
 0x222   : > { %v942_v47 = vadd.f32 %v941_v27, %v940_v18  ;;  %v446_v27 = vlaneseq }
 0x224   : > { %v944_v46 = vadd.f32 %v943_v29, %v942_v47  ;;  %v3683_v11 = vshrl.u32 %v446_v27, 7  ;;  %v962_v47 = vunpack.c.0.s8 %v961_v24  ;;  %v2605_v24 = vld [vmem:[%s4562_s2 + $0x48] sm:$0xff] }
 0x226   : > { %v946_v19 = vadd.f32 %v945_v26, %v944_v46  ;;  %v3686_v16 = vsub.s32 %v962_v47, %v3683_v11 }
 0x228   : > { %v948_v55 = vadd.f32 %v947_v51, %v946_v19 }
 0x22a   : > { %v949_v28 = vrot.slane %v948_v55, 4 }
 0x22c   : > { %v950_v56 = vadd.f32 %v949_v28, %v948_v55 }
 0x22e   : > { %v951_v15 = vrot.slane %v950_v56, 2 }
 0x230   : > { %v952_v50 = vadd.f32 %v951_v15, %v950_v56 }
 0x232   : > { %v953_v49 = vrot.slane %v952_v50, 1 }
 0x234   : > { %v954_v57 = vadd.f32 %v953_v49, %v952_v50  ;;  %v2606_v50 = vld [vmem:[%s4562_s2 + $0x50] sm:$0xff] }
 0x236   : > { %v955_v12 = vmul.f32 0.0078125, %v954_v57  ;;  %v2607_v57 = vld [vmem:[%s4562_s2 + $0x58] sm:$0xff] }
 0x237   : > { %2996 = vmatprep.subr.mxu0 %v2607_v57 }
 0x238   : > { %v957_v18 = vadd.f32 1e-05, %v955_v12  ;;  %2997 = vmatpush3.msra.mxu0 %v2607_v57 }
 0x239   : > { %2998 = vmatprep.subr.mxu0 %v2606_v50 }
 0x23a   : > { %3184 = vrsqrt.f32 %v957_v18  ;;  %2999 = vmatpush3.msra.mxu0 %v2606_v50 }
 0x23b   : > { %3000 = vmatprep.subr.mxu0 %v2605_v24 }
 0x23c   : > { %3001 = vmatpush3.msra.mxu0 %v2605_v24 }
 0x247   : > { %v3185_v13 = vpop.eup %3184 }
 0x248   : > { %v966_v29 = vrot.slane %v3185_v13, %v3686_v16 }
 0x24a   : > { %v973_v46 = vrot.slane %v966_v29, %v3686_v16 }
 0x24c   : > { %974 = vrot.lane.b32.xlu0 %v973_v46, %s3216_s29 }
 0x299   : > { %v2918_v49 = vpop.f32.mrf.mxu0 }
 0x29b   : > { %v1202_v17 = vpop.f32.mrf.mxu0 }
 0x29d   : > { %v2921_v26 = vpop.f32.mrf.mxu0 }
 0x29f   : > { %v1212_v19 = vpop.f32.mrf.mxu0 }
 0x2a1   : > { %v2924_v51 = vpop.f32.mrf.mxu0 }
 0x2a3   : > { %v1222_v55 = vpop.f32.mrf.mxu0 }
 0x2a5   : > { %v2927_v28 = vpop.f32.mrf.mxu0 }
 0x2a7   : > { %v1232_v56 = vpop.f32.mrf.mxu0 }
 0x2a9   : > { %v2930_v15 = vpop.f32.mrf.mxu0 }
 0x2ab   : > { %v1242_v12 = vpop.f32.mrf.mxu0 }
 0x2ad   : > { %v2933_v18 = vpop.f32.mrf.mxu0 }
 0x2af   : > { %v1252_v27 = vpop.f32.mrf.mxu0 }
 0x2b1   : > { %v2936_v47 = vpop.f32.mrf.mxu0 }
 0x2b3   : > { %v1262_v13 = vpop.f32.mrf.mxu0 }
 0x2b5   : > { %v2939_v29 = vpop.f32.mrf.mxu0 }
 0x2b6   : > { %2940 = vmatprep.subr.mxu1 %v2939_v29 }
 0x2b7   : > { %v1272_v46 = vpop.f32.mrf.mxu0  ;;  %2941 = vmatpush3.msra.mxu1 %v2939_v29 }
 0x2b8   : > { %2942 = vmatprep.subr.mxu1 %v1272_v46 }
 0x2b9   : > { %2943 = vmatpush3.msra.mxu1 %v1272_v46 }
 0x2ba   : > { %2944 = vmatprep.subr.mxu1 %v2936_v47 }
 0x2bb   : > { %2945 = vmatpush3.msra.mxu1 %v2936_v47 }
 0x2bc   : > { %2946 = vmatprep.subr.mxu1 %v1262_v13 }
 0x2bd   : > { %2947 = vmatpush3.msra.mxu1 %v1262_v13 }
 0x2be   : > { %2948 = vmatprep.subr.mxu1 %v2933_v18 }
 0x2bf   : > { %2949 = vmatpush3.msra.mxu1 %v2933_v18 }
 0x2c0   : > { %2950 = vmatprep.subr.mxu1 %v1252_v27 }
 0x2c1   : > { %2951 = vmatpush3.msra.mxu1 %v1252_v27 }
 0x2c2   : > { %2952 = vmatprep.subr.mxu1 %v2930_v15 }
 0x2c3   : > { %2953 = vmatpush3.msra.mxu1 %v2930_v15 }
 0x2c4   : > { %2954 = vmatprep.subr.mxu1 %v1242_v12 }
 0x2c5   : > { %2955 = vmatpush3.msra.mxu1 %v1242_v12 }
 0x2c6   : > { %2956 = vmatprep.subr.mxu1 %v2927_v28 }
 0x2c7   : > { %2957 = vmatpush3.msra.mxu1 %v2927_v28 }
 0x2c8   : > { %2958 = vmatprep.subr.mxu1 %v1232_v56 }
 0x2c9   : > { %2959 = vmatpush3.msra.mxu1 %v1232_v56 }
 0x2ca   : > { %2960 = vmatprep.subr.mxu1 %v2924_v51 }
 0x2cb   : > { %2961 = vmatpush3.msra.mxu1 %v2924_v51 }
 0x2cc   : > { %2962 = vmatprep.subr.mxu1 %v1222_v55 }
 0x2cd   : > { %2963 = vmatpush3.msra.mxu1 %v1222_v55 }
 0x2ce   : > { %2964 = vmatprep.subr.mxu1 %v2921_v26 }
 0x2cf   : > { %2965 = vmatpush3.msra.mxu1 %v2921_v26 }
 0x2d0   : > { %2966 = vmatprep.subr.mxu1 %v1212_v19 }
 0x2d1   : > { %2967 = vmatpush3.msra.mxu1 %v1212_v19 }
 0x2d2   : > { %2968 = vmatprep.subr.mxu1 %v2918_v49 }
 0x2d3   : > { %2969 = vmatpush3.msra.mxu1 %v2918_v49 }
 0x2d4   : > { %2970 = vmatprep.subr.mxu1 %v1202_v17 }
 0x2d5   : > { %2971 = vmatpush3.msra.mxu1 %v1202_v17 }
 0x2d6   : > { %2973 = vmatmul.mubr.f32.vlgmr.msra.gmra.mxu1 %v3412_v30  ;;  %v2604_v30 = vld [vmem:[%s4562_s2 + $0x40] sm:$0xff] }
 0x2d7   : > { %2975 = vmatprep.mubr.f32.mxu1 %v3415_v31  ;;  %3002 = vmatprep.subr.mxu0 %v2604_v30  ;;  %v3722_v31 = vld [vmem:[%s4563_s3 + $0x1] ss:$0 sm:$0xff] }
 0x2d8   : > { %3003 = vmatpush3.msra.mxu0 %v2604_v30 }
 0x2da   : > { %2976 = vmatmul.mubr.f32.gmra.mxu1 %v3420_v32 }
 0x2db   : > { %2978 = vmatprep.mubr.f32.mxu1 %v3423_v33 }
 0x2de   : > { %2979 = vmatmul.mubr.f32.gmra.mxu1 %v3428_v34 }
 0x2df   : > { %2981 = vmatprep.mubr.f32.mxu1 %v3431_v35 }
 0x2e2   : > { %2982 = vmatmul.mubr.f32.gmra.mxu1 %v3436_v36 }
 0x2e3   : > { %2984 = vmatprep.mubr.f32.mxu1 %v3439_v37 }
 0x2e6   : > { %2985 = vmatmul.mubr.f32.gmra.mxu1 %v3444_v38 }
 0x2e7   : > { %2987 = vmatprep.mubr.f32.mxu1 %v3447_v39 }
 0x2ea   : > { %2988 = vmatmul.mubr.f32.gmra.mxu1 %v3452_v40 }
 0x2eb   : > { %2990 = vmatprep.mubr.f32.mxu1 %v3455_v41 }
 0x2ee   : > { %2991 = vmatmul.mubr.f32.gmra.mxu1 %v3460_v42 }
 0x2ef   : > { %2993 = vmatprep.mubr.f32.mxu1 %v3463_v43 }
 0x2f2   : > { %2994 = vmatmul.mubr.f32.gmra.mxu1 %v3468_v44 }
 0x2f3   : > { %3060 = vmatprep.mubr.f32.mxu1 %v3399_v10 }
 0x396   : > { %v2974_v32 = vpop.f32.mrf.mxu1 }
 0x397   : > { %v1361_v33 = vadd.f32 %v2974_v32, %v3722_v31 }
 0x398   : > { %v1355_v34 = vpop.f32.mrf.mxu1 }
 0x399   : > { %v1356_v35 = vadd.f32 %v3722_v31, %v1355_v34  ;;  %v3726_v37 = vmax.f32 %v1361_v33, 0.0 }
 0x39a   : > { %v2977_v36 = vpop.f32.mrf.mxu1 }
 0x39b   : > { %v3728_v10 = vmax.f32 %v1356_v35, 0.0  ;;  %v1371_v38 = vadd.f32 %v2977_v36, %v3722_v31  ;;  %v1451_v43 = vsel %vm331_vm0, %v3726_v37, 0.0 }
 0x39c   : > { %v1365_v39 = vpop.f32.mrf.mxu1 }
 0x39d   : > { %v1450_v40 = vsel %vm331_vm0, %v3728_v10, 0.0  ;;  %v1366_v41 = vadd.f32 %v3722_v31, %v1365_v39  ;;  %3004 = vmatprep.mubr.msk.f32.mxu0 %vm331_vm0, %v3728_v10  ;;  %v3740_v44 = vmax.f32 %v1371_v38, 0.0 }
 0x39e   : > { %v2980_v42 = vpop.f32.mrf.mxu1  ;;  %3005 = vmatmul.mubr.msk.f32.vlgmr.msra.gmra.mxu0 %vm331_vm0, %v3726_v37  ;;  %v1452_v24 = vadd.f32 %v1451_v43, %v1450_v40 }
 0x39f   : > { %v3742_v57 = vmax.f32 %v1366_v41, 0.0  ;;  %v1381_v50 = vadd.f32 %v2980_v42, %v3722_v31  ;;  %v1455_v55 = vsel %vm331_vm0, %v3740_v44, 0.0 }
 0x3a0   : > { %v1375_v49 = vpop.f32.mrf.mxu1 }
 0x3a1   : > { %v1453_v17 = vsel %vm331_vm0, %v3742_v57, 0.0  ;;  %v1376_v26 = vadd.f32 %v3722_v31, %v1375_v49  ;;  %3007 = vmatprep.mubr.msk.f32.mxu0 %vm331_vm0, %v3742_v57  ;;  %v3754_v28 = vmax.f32 %v1381_v50, 0.0 }
 0x3a2   : > { %v1454_v19 = vadd.f32 %v1453_v17, %v1452_v24  ;;  %v2983_v51 = vpop.f32.mrf.mxu1  ;;  %3008 = vmatmul.mubr.msk.f32.gmra.mxu0 %vm331_vm0, %v3740_v44 }
 0x3a3   : > { %v3756_v56 = vmax.f32 %v1376_v26, 0.0  ;;  %v1391_v15 = vadd.f32 %v2983_v51, %v3722_v31  ;;  %v1459_v46 = vsel %vm331_vm0, %v3754_v28, 0.0 }
 0x3a4   : > { %v1456_v12 = vadd.f32 %v1455_v55, %v1454_v19  ;;  %v1385_v18 = vpop.f32.mrf.mxu1 }
 0x3a5   : > { %v1457_v27 = vsel %vm331_vm0, %v3756_v56, 0.0  ;;  %v1386_v47 = vadd.f32 %v3722_v31, %v1385_v18  ;;  %3010 = vmatprep.mubr.msk.f32.mxu0 %vm331_vm0, %v3756_v56  ;;  %v3768_v30 = vmax.f32 %v1391_v15, 0.0 }
 0x3a6   : > { %v1458_v13 = vadd.f32 %v1457_v27, %v1456_v12  ;;  %v2986_v29 = vpop.f32.mrf.mxu1  ;;  %3011 = vmatmul.mubr.msk.f32.gmra.mxu0 %vm331_vm0, %v3754_v28 }
 0x3a7   : > { %v3770_v32 = vmax.f32 %v1386_v47, 0.0  ;;  %v1401_v33 = vadd.f32 %v2986_v29, %v3722_v31  ;;  %v1463_v41 = vsel %vm331_vm0, %v3768_v30, 0.0 }
 0x3a8   : > { %v1460_v34 = vadd.f32 %v1459_v46, %v1458_v13  ;;  %v1395_v35 = vpop.f32.mrf.mxu1 }
 0x3a9   : > { %v1461_v36 = vsel %vm331_vm0, %v3770_v32, 0.0  ;;  %v1396_v38 = vadd.f32 %v3722_v31, %v1395_v35  ;;  %3013 = vmatprep.mubr.msk.f32.mxu0 %vm331_vm0, %v3770_v32  ;;  %v3782_v42 = vmax.f32 %v1401_v33, 0.0 }
 0x3aa   : > { %v1462_v39 = vadd.f32 %v1461_v36, %v1460_v34  ;;  %v2989_v40 = vpop.f32.mrf.mxu1  ;;  %3014 = vmatmul.mubr.msk.f32.gmra.mxu0 %vm331_vm0, %v3768_v30 }
 0x3ab   : > { %v3784_v43 = vmax.f32 %v1396_v38, 0.0  ;;  %v1411_v50 = vadd.f32 %v2989_v40, %v3722_v31  ;;  %v1467_v55 = vsel %vm331_vm0, %v3782_v42, 0.0 }
 0x3ac   : > { %v1464_v24 = vadd.f32 %v1463_v41, %v1462_v39  ;;  %v1405_v49 = vpop.f32.mrf.mxu1 }
 0x3ad   : > { %v1465_v17 = vsel %vm331_vm0, %v3784_v43, 0.0  ;;  %v1406_v26 = vadd.f32 %v3722_v31, %v1405_v49  ;;  %3016 = vmatprep.mubr.msk.f32.mxu0 %vm331_vm0, %v3784_v43  ;;  %v3796_v15 = vmax.f32 %v1411_v50, 0.0 }
 0x3ae   : > { %v1466_v19 = vadd.f32 %v1465_v17, %v1464_v24  ;;  %v2992_v51 = vpop.f32.mrf.mxu1  ;;  %3017 = vmatmul.mubr.msk.f32.gmra.mxu0 %vm331_vm0, %v3782_v42 }
 0x3af   : > { %v3798_v12 = vmax.f32 %v1406_v26, 0.0  ;;  %v1421_v18 = vadd.f32 %v2992_v51, %v3722_v31  ;;  %v1471_v34 = vsel %vm331_vm0, %v3796_v15, 0.0 }
 0x3b0   : > { %v1468_v27 = vadd.f32 %v1467_v55, %v1466_v19  ;;  %v1415_v47 = vpop.f32.mrf.mxu1 }
 0x3b1   : > { %v1469_v13 = vsel %vm331_vm0, %v3798_v12, 0.0  ;;  %v1416_v29 = vadd.f32 %v3722_v31, %v1415_v47  ;;  %3019 = vmatprep.mubr.msk.f32.mxu0 %vm331_vm0, %v3798_v12  ;;  %v3810_v35 = vmax.f32 %v1421_v18, 0.0 }
 0x3b2   : > { %v1470_v46 = vadd.f32 %v1469_v13, %v1468_v27  ;;  %v2995_v33 = vpop.f32.mrf.mxu1  ;;  %3020 = vmatmul.mubr.msk.f32.gmra.mxu0 %vm331_vm0, %v3796_v15 }
 0x3b3   : > { %v3812_v36 = vmax.f32 %v1416_v29, 0.0  ;;  %v1431_v38 = vadd.f32 %v2995_v33, %v3722_v31  ;;  %v1475_v49 = vsel %vm331_vm0, %v3810_v35, 0.0 }
 0x3b4   : > { %v1472_v39 = vadd.f32 %v1471_v34, %v1470_v46  ;;  %v1425_v40 = vpop.f32.mrf.mxu1 }
 0x3b5   : > { %v1473_v41 = vsel %vm331_vm0, %v3812_v36, 0.0  ;;  %v1426_v50 = vadd.f32 %v3722_v31, %v1425_v40  ;;  %3022 = vmatprep.mubr.msk.f32.mxu0 %vm331_vm0, %v3812_v36  ;;  %v3824_v17 = vmax.f32 %v1431_v38, 0.0 }
 0x3b6   : > { %v1474_v24 = vadd.f32 %v1473_v41, %v1472_v39  ;;  %3023 = vmatmul.mubr.msk.f32.gmra.mxu0 %vm331_vm0, %v3810_v35 }
 0x3b7   : > { %v1448_v26 = vmax.f32 %v1426_v50, 0.0  ;;  %v1479_v31 = vsel %vm331_vm0, %v3824_v17, 0.0 }
 0x3b8   : > { %v1476_v19 = vadd.f32 %v1475_v49, %v1474_v24 }
 0x3b9   : > { %v1477_v51 = vsel %vm331_vm0, %v1448_v26, 0.0  ;;  %3025 = vmatprep.mubr.msk.f32.mxu0 %vm331_vm0, %v1448_v26 }
 0x3ba   : > { %v1478_v55 = vadd.f32 %v1477_v51, %v1476_v19  ;;  %3026 = vmatmul.mubr.msk.f32.gmra.mxu0 %vm331_vm0, %v3824_v17 }
 0x3bc   : > { %v1480_v18 = vadd.f32 %v1479_v31, %v1478_v55 }
 0x3be   : > { %v1481_v27 = vrot.slane %v1480_v18, 4 }
 0x3c0   : > { %v1482_v47 = vadd.f32 %v1481_v27, %v1480_v18 }
 0x3c2   : > { %v1483_v13 = vrot.slane %v1482_v47, 2 }
 0x3c4   : > { %v1484_v29 = vadd.f32 %v1483_v13, %v1482_v47 }
 0x3c6   : > { %v1485_v46 = vrot.slane %v1484_v29, 1 }
 0x3c8   : > { %v1486_v33 = vadd.f32 %v1485_v46, %v1484_v29 }
 0x3ca   : > { %v1487_v34 = vmul.f32 0.0078125, %v1486_v33 }
 0x3cc   : > { %v3833_v38 = vsub.f32 %v3728_v10, %v1487_v34  ;;  %v3836_v39 = vsub.f32 %v3726_v37, %v1487_v34  ;;  %v3839_v40 = vsub.f32 %v3742_v57, %v1487_v34  ;;  %v3842_v41 = vsub.f32 %v3740_v44, %v1487_v34 }
 0x3cd   : > { %v3849_v49 = vsub.f32 %v3756_v56, %v1487_v34  ;;  %v3854_v37 = vsub.f32 %v3754_v28, %v1487_v34  ;;  %v3861_v55 = vsub.f32 %v3770_v32, %v1487_v34  ;;  %v3867_v28 = vsub.f32 %v3768_v30, %v1487_v34 }
 0x3ce   : > { %v1504_v50 = vmul.f32 %v3833_v38, %v3833_v38  ;;  %v1505_v24 = vmul.f32 %v3836_v39, %v3836_v39  ;;  %v1506_v10 = vmul.f32 %v3839_v40, %v3839_v40  ;;  %v1507_v57 = vmul.f32 %v3842_v41, %v3842_v41 }
 0x3cf   : > { %4612 = vst [vmem:[#allocation13_spill] sm:$0xff] %v3854_v37  ;;  %4613 = vst [vmem:[#allocation14_spill] sm:$0xff] %v3861_v55  ;;  %v1508_v56 = vmul.f32 %v3849_v49, %v3849_v49  ;;  %v1509_v27 = vmul.f32 %v3854_v37, %v3854_v37  ;;  %v3873_v29 = vsub.f32 %v3784_v43, %v1487_v34 }
 0x3d0   : > { %v1520_v44 = vsel %vm331_vm0, %v1504_v50, 0.0  ;;  %v1521_v19 = vsel %vm331_vm0, %v1505_v24, 0.0  ;;  %v1523_v31 = vsel %vm331_vm0, %v1506_v10, 0.0  ;;  %4614 = vst [vmem:[#allocation15_spill] sm:$0xff] %v3867_v28  ;;  %v1525_v47 = vsel %vm331_vm0, %v1507_v57, 0.0 }
 0x3d1   : > { %v1522_v51 = vadd.f32 %v1521_v19, %v1520_v44  ;;  %4615 = vst [vmem:[#allocation16_spill] sm:$0xff] %v3873_v29  ;;  %v1510_v32 = vmul.f32 %v3861_v55, %v3861_v55  ;;  %v1527_v46 = vsel %vm331_vm0, %v1508_v56, 0.0  ;;  %v3879_v50 = vsub.f32 %v3782_v42, %v1487_v34 }
 0x3d2   : > { %v1511_v30 = vmul.f32 %v3867_v28, %v3867_v28  ;;  %v1529_v24 = vsel %vm331_vm0, %v1509_v27, 0.0  ;;  %v3885_v57 = vsub.f32 %v3798_v12, %v1487_v34  ;;  %v1512_v43 = vmul.f32 %v3873_v29, %v3873_v29 }
 0x3d3   : > { %v1524_v18 = vadd.f32 %v1523_v31, %v1522_v51  ;;  %4616 = vst [vmem:[#allocation17_spill] sm:$0xff] %v3879_v50  ;;  %v1531_v44 = vsel %vm331_vm0, %v1510_v32, 0.0  ;;  %v3891_v51 = vsub.f32 %v3796_v15, %v1487_v34  ;;  %v1513_v42 = vmul.f32 %v3879_v50, %v3879_v50 }
 0x3d4   : > { %4617 = vst [vmem:[#allocation18_spill] sm:$0xff] %v3885_v57  ;;  %v1533_v56 = vsel %vm331_vm0, %v1511_v30, 0.0  ;;  %v1514_v12 = vmul.f32 %v3885_v57, %v3885_v57  ;;  %v1535_v27 = vsel %vm331_vm0, %v1512_v43, 0.0 }
 0x3d5   : > { %v1526_v13 = vadd.f32 %v1525_v47, %v1524_v18  ;;  %4618 = vst [vmem:[#allocation19_spill] sm:$0xff] %v3891_v51  ;;  %v3897_v18 = vsub.f32 %v3812_v36, %v1487_v34  ;;  %v1515_v15 = vmul.f32 %v3891_v51, %v3891_v51  ;;  %v1537_v32 = vsel %vm331_vm0, %v1513_v42, 0.0 }
 0x3d6   : > { %v1539_v30 = vsel %vm331_vm0, %v1514_v12, 0.0 }
 0x3d7   : > { %v1528_v33 = vadd.f32 %v1527_v46, %v1526_v13  ;;  %4619 = vst [vmem:[#allocation20_spill] sm:$0xff] %v3897_v18  ;;  %v3903_v13 = vsub.f32 %v3810_v35, %v1487_v34  ;;  %v1516_v36 = vmul.f32 %v3897_v18, %v3897_v18  ;;  %v1541_v43 = vsel %vm331_vm0, %v1515_v15, 0.0 }
 0x3d9   : > { %v1530_v10 = vadd.f32 %v1529_v24, %v1528_v33  ;;  %4620 = vst [vmem:[#allocation21_spill] sm:$0xff] %v3903_v13  ;;  %v3908_v33 = vsub.f32 %v1448_v26, %v1487_v34  ;;  %v1517_v35 = vmul.f32 %v3903_v13, %v3903_v13  ;;  %v1543_v26 = vsel %vm331_vm0, %v1516_v36, 0.0 }
 0x3db   : > { %v1532_v19 = vadd.f32 %v1531_v44, %v1530_v10  ;;  %4621 = vst [vmem:[#allocation22_spill] sm:$0xff] %v3908_v33  ;;  %v3914_v10 = vsub.f32 %v3824_v17, %v1487_v34 }
 0x3dd   : > { %v1534_v31 = vadd.f32 %v1533_v56, %v1532_v19  ;;  %4622 = vst [vmem:[#allocation23_spill] sm:$0xff] %v3914_v10  ;;  %v1518_v19 = vmul.f32 %v3908_v33, %v3908_v33  ;;  %v1519_v56 = vmul.f32 %v3914_v10, %v3914_v10 }
 0x3df   : > { %v1536_v47 = vadd.f32 %v1535_v27, %v1534_v31  ;;  %v1545_v31 = vsel %vm331_vm0, %v1517_v35, 0.0  ;;  %v1547_v17 = vsel %vm331_vm0, %v1518_v19, 0.0  ;;  %v1549_v27 = vsel %vm331_vm0, %v1519_v56, 0.0 }
 0x3e1   : > { %v1538_v46 = vadd.f32 %v1537_v32, %v1536_v47 }
 0x3e3   : > { %v1540_v24 = vadd.f32 %v1539_v30, %v1538_v46 }
 0x3e5   : > { %v1542_v44 = vadd.f32 %v1541_v43, %v1540_v24 }
 0x3e7   : > { %v1544_v42 = vadd.f32 %v1543_v26, %v1542_v44 }
 0x3e9   : > { %v1546_v12 = vadd.f32 %v1545_v31, %v1544_v42 }
 0x3eb   : > { %v1548_v34 = vadd.f32 %v1547_v17, %v1546_v12 }
 0x3ed   : > { %v1550_v47 = vadd.f32 %v1549_v27, %v1548_v34 }
 0x3ef   : > { %v1551_v15 = vrot.slane %v1550_v47, 4 }
 0x3f1   : > { %v1552_v32 = vadd.f32 %v1551_v15, %v1550_v47 }
 0x3f3   : > { %v1553_v46 = vrot.slane %v1552_v32, 2 }
 0x3f5   : > { %v1554_v30 = vadd.f32 %v1553_v46, %v1552_v32 }
 0x3f7   : > { %v1555_v24 = vrot.slane %v1554_v30, 1 }
 0x3f9   : > { %v1556_v43 = vadd.f32 %v1555_v24, %v1554_v30 }
 0x3fb   : > { %v1557_v36 = vmul.f32 0.0078125, %v1556_v43 }
 0x3fd   : > { %v1559_v44 = vadd.f32 1e-05, %v1557_v36  ;;  %v3930_v36 = vpop.permute.xlu0 %974 }
 0x3ff   : > { %3186 = vrsqrt.f32 %v1559_v44  ;;  %v1558_v44 = vld [vmem:[%s4564_s4] sm:$0x1] }
 0x40c   : > { %v3187_v26 = vpop.eup %3186 }
 0x40d   : > { %v1568_v10 = vrot.slane %v3187_v26, %v3686_v16 }
 0x40f   : > { %v1575_v35 = vrot.slane %v1568_v10, %v3686_v16 }
 0x411   : > { %1576 = vrot.lane.b32.xlu0 %v1575_v35, %s3217_s19  ;;  %v3936_v35 = vsub.s32 0, %v3683_v11  ;;  %v3192_v11 = vld [vmem:[%s3396_s17 + $0x8] sm:$0xff] }
 0x45e   : > { %v3006_v19 = vpop.f32.mrf.mxu0 }
 0x460   : > { %v1804_v42 = vpop.f32.mrf.mxu0 }
 0x462   : > { %v3009_v56 = vpop.f32.mrf.mxu0 }
 0x464   : > { %v1814_v31 = vpop.f32.mrf.mxu0 }
 0x466   : > { %v3012_v12 = vpop.f32.mrf.mxu0 }
 0x468   : > { %v1824_v17 = vpop.f32.mrf.mxu0 }
 0x46a   : > { %v3015_v34 = vpop.f32.mrf.mxu0 }
 0x46c   : > { %v1834_v27 = vpop.f32.mrf.mxu0 }
 0x46e   : > { %v3018_v47 = vpop.f32.mrf.mxu0 }
 0x470   : > { %v1844_v15 = vpop.f32.mrf.mxu0 }
 0x472   : > { %v3021_v32 = vpop.f32.mrf.mxu0 }
 0x474   : > { %v1854_v46 = vpop.f32.mrf.mxu0 }
 0x476   : > { %v3024_v30 = vpop.f32.mrf.mxu0 }
 0x478   : > { %v1864_v24 = vpop.f32.mrf.mxu0 }
 0x47a   : > { %v3027_v43 = vpop.f32.mrf.mxu0 }
 0x47b   : > { %3028 = vmatprep.subr.mxu1 %v3027_v43 }
 0x47c   : > { %v1874_v10 = vpop.f32.mrf.mxu0  ;;  %3029 = vmatpush3.msra.mxu1 %v3027_v43 }
 0x47d   : > { %3030 = vmatprep.subr.mxu1 %v1874_v10 }
 0x47e   : > { %3031 = vmatpush3.msra.mxu1 %v1874_v10  ;;  %v3206_v10 = vld [vmem:[%s3396_s17 + $0x78] sm:$0xff] }
 0x47f   : > { %3032 = vmatprep.subr.mxu1 %v3024_v30 }
 0x480   : > { %3033 = vmatpush3.msra.mxu1 %v3024_v30 }
 0x481   : > { %3034 = vmatprep.subr.mxu1 %v1864_v24 }
 0x482   : > { %3035 = vmatpush3.msra.mxu1 %v1864_v24  ;;  %v3205_v24 = vld [vmem:[%s3396_s17 + $0x70] sm:$0xff] }
 0x483   : > { %3036 = vmatprep.subr.mxu1 %v3021_v32  ;;  %v1577_v26 = vpop.permute.xlu0 %1576 }
 0x484   : > { %3037 = vmatpush3.msra.mxu1 %v3021_v32  ;;  %v1579_v43 = vmul.f32 %v1577_v26, %v1558_v44  ;;  %v3203_v32 = vld [vmem:[%s3396_s17 + $0x60] sm:$0xff] }
 0x485   : > { %3038 = vmatprep.subr.mxu1 %v1854_v46  ;;  %v3958_v44 = vld [vmem:[%s4563_s3 + $0x2] ss:$0 sm:$0xff] }
 0x486   : > { %3039 = vmatpush3.msra.mxu1 %v1854_v46  ;;  %v1584_v30 = vrot.slane %v1579_v43, %v3936_v35  ;;  %v3204_v46 = vld [vmem:[%s3396_s17 + $0x68] sm:$0xff] }
 0x487   : > { %3040 = vmatprep.subr.mxu1 %v3018_v47 }
 0x488   : > { %3041 = vmatpush3.msra.mxu1 %v3018_v47  ;;  %1585 = vrot.lane.b32.xlu0 %v1584_v30, %s3217_s19  ;;  %v3201_v47 = vld [vmem:[%s3396_s17 + $0x50] sm:$0xff] }
 0x489   : > { %3042 = vmatprep.subr.mxu1 %v1844_v15 }
 0x48a   : > { %3043 = vmatpush3.msra.mxu1 %v1844_v15  ;;  %v3202_v15 = vld [vmem:[%s3396_s17 + $0x58] sm:$0xff] }
 0x48b   : > { %3044 = vmatprep.subr.mxu1 %v3015_v34 }
 0x48c   : > { %3045 = vmatpush3.msra.mxu1 %v3015_v34  ;;  %v3193_v34 = vld [vmem:[%s3396_s17 + $0x10] sm:$0xff] }
 0x48d   : > { %3046 = vmatprep.subr.mxu1 %v1834_v27 }
 0x48e   : > { %3047 = vmatpush3.msra.mxu1 %v1834_v27  ;;  %v3200_v27 = vld [vmem:[%s3396_s17 + $0x48] sm:$0xff] }
 0x48f   : > { %3048 = vmatprep.subr.mxu1 %v3012_v12 }
 0x490   : > { %3049 = vmatpush3.msra.mxu1 %v3012_v12  ;;  %v3194_v12 = vld [vmem:[%s3396_s17 + $0x18] sm:$0xff] }
 0x491   : > { %3050 = vmatprep.subr.mxu1 %v1824_v17 }
 0x492   : > { %3051 = vmatpush3.msra.mxu1 %v1824_v17  ;;  %v3195_v17 = vld [vmem:[%s3396_s17 + $0x20] sm:$0xff] }
 0x493   : > { %3052 = vmatprep.subr.mxu1 %v3009_v56 }
 0x494   : > { %3053 = vmatpush3.msra.mxu1 %v3009_v56  ;;  %v3196_v56 = vld [vmem:[%s3396_s17 + $0x28] sm:$0xff] }
 0x495   : > { %3054 = vmatprep.subr.mxu1 %v1814_v31 }
 0x496   : > { %3055 = vmatpush3.msra.mxu1 %v1814_v31  ;;  %v3197_v31 = vld [vmem:[%s3396_s17 + $0x30] sm:$0xff] }
 0x497   : > { %3056 = vmatprep.subr.mxu1 %v3006_v19 }
 0x498   : > { %3057 = vmatpush3.msra.mxu1 %v3006_v19  ;;  %v3198_v19 = vld [vmem:[%s3396_s17 + $0x38] sm:$0xff] }
 0x499   : > { %3058 = vmatprep.subr.mxu1 %v1804_v42 }
 0x49a   : > { %3059 = vmatpush3.msra.mxu1 %v1804_v42  ;;  %v3199_v42 = vld [vmem:[%s3396_s17 + $0x40] sm:$0xff] }
 0x49b   : > { %3061 = vmatmul.mubr.f32.vlgmr.msra.gmra.mxu1 %v3192_v11 }
 0x49c   : > { %3063 = vmatprep.mubr.f32.mxu1 %v3193_v34 }
 0x49f   : > { %3064 = vmatmul.mubr.f32.gmra.mxu1 %v3194_v12 }
 0x4a0   : > { %3066 = vmatprep.mubr.f32.mxu1 %v3195_v17 }
 0x4a3   : > { %3067 = vmatmul.mubr.f32.gmra.mxu1 %v3196_v56 }
 0x4a4   : > { %3069 = vmatprep.mubr.f32.mxu1 %v3197_v31 }
 0x4a7   : > { %3070 = vmatmul.mubr.f32.gmra.mxu1 %v3198_v19 }
 0x4a8   : > { %3072 = vmatprep.mubr.f32.mxu1 %v3199_v42 }
 0x4ab   : > { %3073 = vmatmul.mubr.f32.gmra.mxu1 %v3200_v27 }
 0x4ac   : > { %3075 = vmatprep.mubr.f32.mxu1 %v3201_v47 }
 0x4af   : > { %3076 = vmatmul.mubr.f32.gmra.mxu1 %v3202_v15 }
 0x4b0   : > { %3078 = vmatprep.mubr.f32.mxu1 %v3203_v32 }
 0x4b3   : > { %3079 = vmatmul.mubr.f32.gmra.mxu1 %v3204_v46 }
 0x4b4   : > { %3081 = vmatprep.mubr.f32.mxu1 %v3205_v24 }
 0x4b7   : > { %3082 = vmatmul.mubr.f32.gmra.mxu1 %v3206_v10 }
 0x55b   : > { %v3062_v26 = vpop.f32.mrf.mxu1 }
 0x55c   : > { %v3961_v43 = vadd.f32 %v3062_v26, %v3958_v44 }
 0x55d   : > { %v1957_v30 = vpop.f32.mrf.mxu1 }
 0x55e   : > { %v3964_v11 = vadd.f32 %v3958_v44, %v1957_v30  ;;  %v4574_v12 = vmax.f32 %v3961_v43, 0.0 }
 0x55f   : > { %v3065_v34 = vpop.f32.mrf.mxu1 }
 0x560   : > { %v4575_v17 = vmax.f32 %v3964_v11, 0.0  ;;  %v3969_v56 = vadd.f32 %v3065_v34, %v3958_v44  ;;  %v2053_v47 = vsel %vm331_vm0, %v4574_v12, 0.0  ;;  %v4623_v54 = vmax.f32 %v3964_v11, 0.0 }
 0x561   : > { %v1967_v31 = vpop.f32.mrf.mxu1 }
 0x562   : > { %v2052_v19 = vsel %vm331_vm0, %v4575_v17, 0.0  ;;  %v3975_v42 = vadd.f32 %v3958_v44, %v1967_v31  ;;  %v4578_v15 = vmax.f32 %v3969_v56, 0.0 }
 0x563   : > { %v3068_v27 = vpop.f32.mrf.mxu1  ;;  %v2054_v24 = vadd.f32 %v2053_v47, %v2052_v19 }
 0x564   : > { %v4577_v32 = vmax.f32 %v3975_v42, 0.0  ;;  %v3983_v46 = vadd.f32 %v3068_v27, %v3958_v44  ;;  %v2057_v12 = vsel %vm331_vm0, %v4578_v15, 0.0 }
 0x565   : > { %v1977_v10 = vpop.f32.mrf.mxu1 }
 0x566   : > { %v2055_v26 = vsel %vm331_vm0, %v4577_v32, 0.0  ;;  %v3989_v30 = vadd.f32 %v3958_v44, %v1977_v10  ;;  %v4582_v17 = vmax.f32 %v3983_v46, 0.0 }
 0x567   : > { %v2056_v34 = vadd.f32 %v2055_v26, %v2054_v24  ;;  %v3071_v31 = vpop.f32.mrf.mxu1 }
 0x568   : > { %v4581_v27 = vmax.f32 %v3989_v30, 0.0  ;;  %v3997_v19 = vadd.f32 %v3071_v31, %v3958_v44  ;;  %v2061_v15 = vsel %vm331_vm0, %v4582_v17, 0.0 }
 0x569   : > { %v2058_v47 = vadd.f32 %v2057_v12, %v2056_v34  ;;  %v1987_v13 = vpop.f32.mrf.mxu1 }
 0x56a   : > { %v2059_v10 = vsel %vm331_vm0, %v4581_v27, 0.0  ;;  %v4003_v24 = vadd.f32 %v3958_v44, %v1987_v13  ;;  %v4586_v33 = vmax.f32 %v3997_v19, 0.0 }
 0x56b   : > { %v2060_v26 = vadd.f32 %v2059_v10, %v2058_v47  ;;  %v3074_v32 = vpop.f32.mrf.mxu1 }
 0x56c   : > { %v4585_v31 = vmax.f32 %v4003_v24, 0.0  ;;  %v4011_v12 = vadd.f32 %v3074_v32, %v3958_v44  ;;  %v2065_v17 = vsel %vm331_vm0, %v4586_v33, 0.0 }
 0x56d   : > { %v2062_v34 = vadd.f32 %v2061_v15, %v2060_v26  ;;  %v1997_v18 = vpop.f32.mrf.mxu1 }
 0x56e   : > { %v2063_v13 = vsel %vm331_vm0, %v4585_v31, 0.0  ;;  %v4017_v47 = vadd.f32 %v3958_v44, %v1997_v18  ;;  %v4590_v51 = vmax.f32 %v4011_v12, 0.0 }
 0x56f   : > { %v2064_v10 = vadd.f32 %v2063_v13, %v2062_v34  ;;  %v3077_v27 = vpop.f32.mrf.mxu1 }
 0x570   : > { %v4589_v32 = vmax.f32 %v4017_v47, 0.0  ;;  %v4025_v15 = vadd.f32 %v3077_v27, %v3958_v44  ;;  %v2069_v33 = vsel %vm331_vm0, %v4590_v51, 0.0 }
 0x571   : > { %v2066_v26 = vadd.f32 %v2065_v17, %v2064_v10  ;;  %v2007_v57 = vpop.f32.mrf.mxu1 }
 0x572   : > { %v2067_v18 = vsel %vm331_vm0, %v4589_v32, 0.0  ;;  %v4031_v34 = vadd.f32 %v3958_v44, %v2007_v57  ;;  %v4593_v14 = vmax.f32 %v4025_v15, 0.0 }
 0x573   : > { %v2068_v13 = vadd.f32 %v2067_v18, %v2066_v26  ;;  %v3080_v31 = vpop.f32.mrf.mxu1 }
 0x574   : > { %v2046_v27 = vmax.f32 %v4031_v34, 0.0  ;;  %v4039_v17 = vadd.f32 %v3080_v31, %v3958_v44  ;;  %v2073_v51 = vsel %vm331_vm0, %v4593_v14, 0.0 }
 0x575   : > { %v2070_v10 = vadd.f32 %v2069_v33, %v2068_v13  ;;  %v2017_v50 = vpop.f32.mrf.mxu1 }
 0x576   : > { %v2071_v32 = vsel %vm331_vm0, %v2046_v27, 0.0  ;;  %v4043_v57 = vadd.f32 %v3958_v44, %v2017_v50  ;;  %v4598_v29 = vmax.f32 %v4039_v17, 0.0 }
 0x577   : > { %v2072_v26 = vadd.f32 %v2071_v32, %v2070_v10  ;;  %v3083_v18 = vpop.f32.mrf.mxu1 }
 0x578   : > { %v2048_v34 = vmax.f32 %v4043_v57, 0.0  ;;  %v4051_v31 = vadd.f32 %v3083_v18, %v3958_v44  ;;  %v2077_v10 = vsel %vm331_vm0, %v4598_v29, 0.0 }
 0x579   : > { %v2074_v33 = vadd.f32 %v2073_v51, %v2072_v26  ;;  %v2027_v13 = vpop.f32.mrf.mxu1 }
 0x57a   : > { %v2075_v53 = vsel %vm331_vm0, %v2048_v34, 0.0  ;;  %v4055_v50 = vadd.f32 %v3958_v44, %v2027_v13  ;;  %v2051_v14 = vmax.f32 %v4051_v31, 0.0 }
 0x57b   : > { %v2076_v32 = vadd.f32 %v2075_v53, %v2074_v33 }
 0x57c   : > { %v2050_v45 = vmax.f32 %v4055_v50, 0.0  ;;  %v2081_v51 = vsel %vm331_vm0, %v2051_v14, 0.0  ;;  %v4624_v50 = vmax.f32 %v3961_v43, 0.0 }
 0x57d   : > { %v2078_v57 = vadd.f32 %v2077_v10, %v2076_v32  ;;  %v4625_v10 = vmax.f32 %v3975_v42, 0.0  ;;  %v4628_v42 = vmax.f32 %v3983_v46, 0.0 }
 0x57e   : > { %v2079_v18 = vsel %vm331_vm0, %v2050_v45, 0.0 }
 0x57f   : > { %v2080_v28 = vadd.f32 %v2079_v18, %v2078_v57 }
 0x581   : > { %v2082_v26 = vadd.f32 %v2081_v51, %v2080_v28  ;;  %v4626_v28 = vmax.f32 %v3969_v56, 0.0 }
 0x583   : > { %v2083_v44 = vrot.slane %v2082_v26, 4 }
 0x585   : > { %v2084_v13 = vadd.f32 %v2083_v44, %v2082_v26 }
 0x587   : > { %v2085_v53 = vrot.slane %v2084_v13, 2 }
 0x589   : > { %v2086_v33 = vadd.f32 %v2085_v53, %v2084_v13  ;;  %v4629_v53 = vmax.f32 %v4003_v24, 0.0  ;;  %v4631_v24 = vmax.f32 %v4017_v47, 0.0 }
 0x58b   : > { %v2087_v55 = vrot.slane %v2086_v33, 1 }
 0x58d   : > { %v2088_v23 = vadd.f32 %v2087_v55, %v2086_v33 }
 0x58f   : > { %v2089_v29 = vmul.f32 0.0078125, %v2088_v23 }
 0x591   : > { %v4068_v37 = vsub.f32 %v4623_v54, %v2089_v29  ;;  %v4072_v32 = vsub.f32 %v4624_v50, %v2089_v29  ;;  %v4076_v57 = vsub.f32 %v4625_v10, %v2089_v29  ;;  %v4080_v18 = vsub.f32 %v4626_v28, %v2089_v29 }
 0x592   : > { %v4627_v54 = vmax.f32 %v3989_v30, 0.0  ;;  %v4094_v51 = vsub.f32 %v4628_v42, %v2089_v29  ;;  %v4102_v30 = vsub.f32 %v4629_v53, %v2089_v29  ;;  %v4630_v10 = vmax.f32 %v3997_v19, 0.0 }
 0x593   : > { %v2106_v55 = vmul.f32 %v4068_v37, %v4068_v37  ;;  %v2107_v23 = vmul.f32 %v4072_v32, %v4072_v32  ;;  %v2108_v43 = vmul.f32 %v4076_v57, %v4076_v57  ;;  %v2109_v56 = vmul.f32 %v4080_v18, %v4080_v18 }
 0x594   : > { %v4088_v11 = vsub.f32 %v4627_v54, %v2089_v29  ;;  %v4109_v28 = vsub.f32 %v4630_v10, %v2089_v29  ;;  %v4116_v42 = vsub.f32 %v4631_v24, %v2089_v29  ;;  %v4632_v19 = vmax.f32 %v4011_v12, 0.0 }
 0x595   : > { %v2122_v26 = vsel %vm331_vm0, %v2106_v55, 0.0  ;;  %v2123_v44 = vsel %vm331_vm0, %v2107_v23, 0.0  ;;  %v2125_v50 = vsel %vm331_vm0, %v2108_v43, 0.0  ;;  %v2111_v55 = vmul.f32 %v4094_v51, %v4094_v51 }
 0x596   : > { %v2124_v13 = vadd.f32 %v2123_v44, %v2122_v26  ;;  %v2110_v33 = vmul.f32 %v4088_v11, %v4088_v11  ;;  %v2127_v23 = vsel %vm331_vm0, %v2109_v56, 0.0  ;;  %v2112_v26 = vmul.f32 %v4102_v30, %v4102_v30 }
 0x597   : > { %v2113_v53 = vmul.f32 %v4109_v28, %v4109_v28  ;;  %v2131_v56 = vsel %vm331_vm0, %v2111_v55, 0.0  ;;  %v2114_v47 = vmul.f32 %v4116_v42, %v4116_v42  ;;  %v4140_v55 = vsub.f32 %v2048_v34, %v2089_v29 }
 0x598   : > { %v2126_v46 = vadd.f32 %v2125_v50, %v2124_v13  ;;  %v2129_v43 = vsel %vm331_vm0, %v2110_v33, 0.0  ;;  %v4123_v13 = vsub.f32 %v4632_v19, %v2089_v29  ;;  %v2133_v10 = vsel %vm331_vm0, %v2112_v26, 0.0 }
 0x599   : > { %v4633_v33 = vmax.f32 %v4025_v15, 0.0  ;;  %v2135_v24 = vsel %vm331_vm0, %v2113_v53, 0.0  ;;  %v4634_v26 = vmax.f32 %v4039_v17, 0.0  ;;  %v4152_v53 = vsub.f32 %v2050_v45, %v2089_v29 }
 0x59a   : > { %v2128_v54 = vadd.f32 %v2127_v23, %v2126_v46  ;;  %v4128_v46 = vsub.f32 %v2046_v27, %v2089_v29  ;;  %v2115_v12 = vmul.f32 %v4123_v13, %v4123_v13  ;;  %v2118_v34 = vmul.f32 %v4140_v55, %v4140_v55 }
 0x59b   : > { %v2120_v45 = vmul.f32 %v4152_v53, %v4152_v53 }
 0x59c   : > { %v2130_v44 = vadd.f32 %v2129_v43, %v2128_v54  ;;  %v4135_v54 = vsub.f32 %v4633_v33, %v2089_v29  ;;  %v2116_v27 = vmul.f32 %v4128_v46, %v4128_v46 }
 0x59e   : > { %v2132_v50 = vadd.f32 %v2131_v56, %v2130_v44  ;;  %v2137_v44 = vsel %vm331_vm0, %v2114_v47, 0.0  ;;  %v4147_v56 = vsub.f32 %v4634_v26, %v2089_v29  ;;  %v2117_v15 = vmul.f32 %v4135_v54, %v4135_v54 }
 0x59f   : > { %v4159_v47 = vsub.f32 %v2051_v14, %v2089_v29  ;;  %v2149_v14 = vsel %vm331_vm0, %v2120_v45, 0.0 }
 0x5a0   : > { %v2134_v23 = vadd.f32 %v2133_v10, %v2132_v50  ;;  %4635 = vst [vmem:[#allocation24_spill] sm:$0xff] %v4147_v56  ;;  %v2139_v50 = vsel %vm331_vm0, %v2115_v12, 0.0  ;;  %v2119_v17 = vmul.f32 %v4147_v56, %v4147_v56  ;;  %v2145_v12 = vsel %vm331_vm0, %v2118_v34, 0.0 }
 0x5a2   : > { %v2136_v43 = vadd.f32 %v2135_v24, %v2134_v23  ;;  %v2141_v23 = vsel %vm331_vm0, %v2116_v27, 0.0  ;;  %v2143_v24 = vsel %vm331_vm0, %v2117_v15, 0.0  ;;  %v2121_v27 = vmul.f32 %v4159_v47, %v4159_v47 }
 0x5a4   : > { %v2138_v19 = vadd.f32 %v2137_v44, %v2136_v43  ;;  %v2151_v26 = vsel %vm331_vm0, %v2121_v27, 0.0  ;;  %v389_v27 = vmul.f32 %v3362_v60, %v3362_v60 }
 0x5a6   : > { %v2140_v10 = vadd.f32 %v2139_v50, %v2138_v19  ;;  %v2147_v19 = vsel %vm331_vm0, %v2119_v17, 0.0  ;;  %v388_v17 = vmul.f32 %v3359_v59, %v3359_v59 }
 0x5a8   : > { %v2142_v33 = vadd.f32 %v2141_v23, %v2140_v10 }
 0x5aa   : > { %v2144_v43 = vadd.f32 %v2143_v24, %v2142_v33 }
 0x5ac   : > { %v2146_v44 = vadd.f32 %v2145_v12, %v2144_v43  ;;  %v387_v12 = vmul.f32 %v3356_v58, %v3356_v58 }
 0x5ae   : > { %v2148_v31 = vadd.f32 %v2147_v19, %v2146_v44  ;;  %v403_v45 = vsel %vm331_vm0, %v387_v12, 0.0  ;;  %v404_v44 = vsel %vm331_vm0, %v388_v17, 0.0 }
 0x5af   : > { %v405_v19 = vadd.f32 %v404_v44, %v403_v45  ;;  %v393_v44 = vmul.f32 %v3372_v0, %v3372_v0 }
 0x5b0   : > { %v2150_v29 = vadd.f32 %v2149_v14, %v2148_v31  ;;  %v406_v31 = vsel %vm331_vm0, %v389_v27, 0.0  ;;  %v394_v27 = vmul.f32 %v3374_v1, %v3374_v1 }
 0x5b2   : > { %v2152_v50 = vadd.f32 %v2151_v26, %v2150_v29  ;;  %v407_v29 = vadd.f32 %v406_v31, %v405_v19  ;;  %v956_v26 = vld [vmem:[%s4564_s4] sm:$0x1]  ;;  %v416_v31 = vsel %vm331_vm0, %v394_v27, 0.0  ;;  %v401_v27 = vmul.f32 %v3388_v8, %v3388_v8 }
 0x5b4   : > { %v2153_v15 = vrot.slane %v2152_v50, 4 }
 0x5b6   : > { %v2154_v10 = vadd.f32 %v2153_v15, %v2152_v50  ;;  %v391_v15 = vmul.f32 %v3368_v62, %v3368_v62 }
 0x5b8   : > { %v2155_v23 = vrot.slane %v2154_v10, 2 }
 0x5ba   : > { %v2156_v33 = vadd.f32 %v2155_v23, %v2154_v10  ;;  %v977_v23 = vmul.f32 %v3930_v36, %v956_v26  ;;  %v414_v36 = vsel %vm331_vm0, %v393_v44, 0.0  ;;  %v396_v26 = vmul.f32 %v3378_v3, %v3378_v3 }
 0x5bb   : > { %v400_v44 = vmul.f32 %v3386_v7, %v3386_v7 }
 0x5bc   : > { %v2157_v24 = vrot.slane %v2156_v33, 1  ;;  %v982_v12 = vrot.slane %v977_v23, %v3936_v35 }
 0x5be   : > { %v2158_v56 = vadd.f32 %v2157_v24, %v2156_v33 }
 0x5c0   : > { %v2159_v34 = vmul.f32 0.0078125, %v2158_v56  ;;  %v390_v56 = vmul.f32 %v3365_v61, %v3365_v61 }
 0x5c2   : > { %v2161_v43 = vadd.f32 1e-05, %v2159_v34  ;;  %v408_v50 = vsel %vm331_vm0, %v390_v56, 0.0  ;;  %v410_v34 = vsel %vm331_vm0, %v391_v15, 0.0  ;;  %v395_v56 = vmul.f32 %v3376_v2, %v3376_v2 }
 0x5c3   : > { %v409_v24 = vadd.f32 %v408_v50, %v407_v29  ;;  %v420_v15 = vsel %vm331_vm0, %v396_v26, 0.0 }
 0x5c4   : > { %3188 = vrsqrt.f32 %v2161_v43  ;;  %v392_v43 = vmul.f32 %v3370_v63, %v3370_v63  ;;  %v418_v29 = vsel %vm331_vm0, %v395_v56, 0.0  ;;  %v402_v56 = vmul.f32 %v3390_v9, %v3390_v9 }
 0x5c5   : > { %v411_v17 = vadd.f32 %v410_v34, %v409_v24  ;;  %v398_v24 = vmul.f32 %v3382_v5, %v3382_v5 }
 0x5c6   : > { %v412_v45 = vsel %vm331_vm0, %v392_v43, 0.0 }
 0x5c7   : > { %v424_v43 = vsel %vm331_vm0, %v398_v24, 0.0 }
 0x5d1   : > { %v3189_v14 = vpop.eup %3188 }
 0x5d2   : > { %v2170_v10 = vrot.slane %v3189_v14, %v3686_v16 }
 0x5d4   : > { %v2177_v33 = vrot.slane %v2170_v10, %v3686_v16  ;;  %v413_v16 = vadd.f32 %v412_v45, %v411_v17  ;;  %v397_v10 = vmul.f32 %v3380_v4, %v3380_v4 }
 0x5d6   : > { %2178 = vrot.lane.b32.xlu1 %v2177_v33, %s3218_s26  ;;  %v415_v19 = vadd.f32 %v414_v36, %v413_v16  ;;  %v422_v33 = vsel %vm331_vm0, %v397_v10, 0.0  ;;  %v428_v36 = vsel %vm331_vm0, %v400_v44, 0.0 }
 0x5d8   : > { %v417_v14 = vadd.f32 %v416_v31, %v415_v19  ;;  %v430_v31 = vsel %vm331_vm0, %v401_v27, 0.0 }
 0x5da   : > { %983 = vrot.lane.b32.xlu1 %v982_v12, %s3218_s26  ;;  %v419_v50 = vadd.f32 %v418_v29, %v417_v14  ;;  %v399_v12 = vmul.f32 %v3384_v6, %v3384_v6  ;;  %v432_v29 = vsel %vm331_vm0, %v402_v56, 0.0 }
 0x5dc   : > { %v421_v23 = vadd.f32 %v420_v15, %v419_v50  ;;  %v426_v45 = vsel %vm331_vm0, %v399_v12, 0.0 }
 0x5de   : > { %v423_v34 = vadd.f32 %v422_v33, %v421_v23 }
 0x5e0   : > { %v425_v17 = vadd.f32 %v424_v43, %v423_v34 }
 0x5e2   : > { %v427_v16 = vadd.f32 %v426_v45, %v425_v17  ;;  %v441_v17 = vld [vmem:[%s4564_s4] sm:$0x1] }
 0x5e4   : > { %v429_v19 = vadd.f32 %v428_v36, %v427_v16 }
 0x5e6   : > { %v431_v14 = vadd.f32 %v430_v31, %v429_v19 }
 0x5e8   : > { %v433_v26 = vadd.f32 %v432_v29, %v431_v14  ;;  %v4250_v14 = vpop.permute.xlu0 %1585 }
 0x5e9   : > { %v1589_v29 = vmul.f32 %v4250_v14, %v3836_v39 }
 0x5ea   : > { %v434_v50 = vrot.slane %v433_v26, 4 }
 0x5ec   : > { %v435_v15 = vadd.f32 %v434_v50, %v433_v26 }
 0x5ee   : > { %v436_v10 = vrot.slane %v435_v15, 2 }
 0x5f0   : > { %v437_v23 = vadd.f32 %v436_v10, %v435_v15  ;;  %v4637_v15 = vld [vmem:[#allocation3_spill] sm:$0xff] }
 0x5f2   : > { %v438_v33 = vrot.slane %v437_v23, 1 }
 0x5f4   : > { %v439_v24 = vadd.f32 %v438_v33, %v437_v23  ;;  %v4639_v23 = vld [vmem:[#allocation14_spill] sm:$0xff] }
 0x5f5   : > { %v1594_v33 = vmul.f32 %v4250_v14, %v4639_v23  ;;  %v2312_v23 = vld [vmem:[%s4565_s5 + $0x48] sm:$0xff] }
 0x5f6   : > { %v440_v34 = vmul.f32 0.0078125, %v439_v24 }
 0x5f8   : > { %v442_v43 = vadd.f32 1e-05, %v440_v34 }
 0x5fa   : > { %3190 = vrsqrt.f32 %v442_v43  ;;  %v4641_v43 = vld [vmem:[#allocation5_spill] sm:$0xff] }
 0x607   : > { %v3191_v12 = vpop.eup %3190 }
 0x608   : > { %v444_v45 = vmul.f32 %v3191_v12, %v441_v17 }
 0x60a   : > { %v4233_v44 = vrot.slane %v444_v45, %v3936_v35 }
 0x60c   : > { %v452_v16 = vmul.f32 %v4233_v44, %v3359_v59  ;;  %v451_v36 = vmul.f32 %v4233_v44, %v3356_v58  ;;  %v453_v19 = vmul.f32 %v4233_v44, %v3362_v60  ;;  %v2160_v58 = vld [vmem:[%s4564_s4] sm:$0x1]  ;;  %v455_v26 = vmul.f32 %v4233_v44, %v3368_v62 }
 0x60d   : > { %v1590_v62 = vmul.f32 %v4250_v14, %v3839_v40  ;;  %v1592_v40 = vmul.f32 %v4250_v14, %v3849_v49  ;;  %v461_v24 = vmul.f32 %v4233_v44, %v3380_v4  ;;  %v462_v17 = vmul.f32 %v4233_v44, %v3382_v5  ;;  %v4642_v4 = vld [vmem:[#allocation6_spill] sm:$0xff]  ;;  %v4644_v5 = vld [vmem:[#allocation17_spill] sm:$0xff] }
 0x60e   : > { %468 = vst.msk [vmem:[#allocation2 + $0x8] sm:$0xff] %vm331_vm0, %v452_v16  ;;  %467 = vst.msk [vmem:[#allocation2] sm:$0xff] %vm331_vm0, %v451_v36  ;;  %v4643_v16 = vld [vmem:[#allocation16_spill] sm:$0xff] }
 0x60f   : > { %469 = vst.msk [vmem:[#allocation2 + $0x10] sm:$0xff] %vm331_vm0, %v453_v19  ;;  %471 = vst.msk [vmem:[#allocation2 + $0x20] sm:$0xff] %vm331_vm0, %v455_v26  ;;  %v1596_v36 = vmul.f32 %v4250_v14, %v4643_v16  ;;  %v1597_v19 = vmul.f32 %v4250_v14, %v4644_v5  ;;  %v2303_v16 = vld [vmem:[%s4565_s5] sm:$0xff] }
 0x610   : > { %477 = vst.msk [vmem:[#allocation2 + $0x50] sm:$0xff] %vm331_vm0, %v461_v24  ;;  %478 = vst.msk [vmem:[#allocation2 + $0x58] sm:$0xff] %vm331_vm0, %v462_v17  ;;  %v2309_v24 = vld [vmem:[%s4565_s5 + $0x30] sm:$0xff] }
 0x648   : > { %v2179_v27 = vpop.permute.xlu1 %2178 }
 0x649   : > { %v2181_v60 = vmul.f32 %v2179_v27, %v2160_v58  ;;  %v463_v27 = vmul.f32 %v4233_v44, %v3384_v6  ;;  %v465_v58 = vmul.f32 %v4233_v44, %v3388_v8  ;;  %v4646_v6 = vld [vmem:[#allocation8_spill] sm:$0xff]  ;;  %v466_v8 = vmul.f32 %v4233_v44, %v3390_v9  ;;  %v4651_v9 = vld [vmem:[#allocation10_spill] sm:$0xff] }
 0x64b   : > { %v2186_v50 = vrot.slane %v2181_v60, %v3936_v35  ;;  %v457_v35 = vmul.f32 %v4233_v44, %v3372_v0  ;;  %479 = vst.msk [vmem:[#allocation2 + $0x60] sm:$0xff] %vm331_vm0, %v463_v27  ;;  %v464_v60 = vmul.f32 %v4233_v44, %v3386_v7  ;;  %481 = vst.msk [vmem:[#allocation2 + $0x70] sm:$0xff] %vm331_vm0, %v465_v58  ;;  %v4648_v7 = vld [vmem:[#allocation19_spill] sm:$0xff] }
 0x64c   : > { %v4244_v31 = vpop.permute.xlu1 %983  ;;  %482 = vst.msk [vmem:[#allocation2 + $0x78] sm:$0xff] %vm331_vm0, %v466_v8  ;;  %v1599_v26 = vmul.f32 %v4250_v14, %v4648_v7 }
 0x64d   : > { %v987_v56 = vmul.f32 %v4244_v31, %v3592_v21  ;;  %v986_v59 = vmul.f32 %v4244_v31, %v3589_v20  ;;  %v1588_v21 = vmul.f32 %v4250_v14, %v3833_v38  ;;  %v454_v20 = vmul.f32 %v4233_v44, %v3365_v61  ;;  %473 = vst.msk [vmem:[#allocation2 + $0x30] sm:$0xff] %vm331_vm0, %v457_v35  ;;  %v2317_v35 = vld [vmem:[%s4565_s5 + $0x70] sm:$0xff] }
 0x64e   : > { %v988_v39 = vmul.f32 %v4244_v31, %v3595_v22  ;;  %v456_v38 = vmul.f32 %v4233_v44, %v3370_v63  ;;  %v989_v61 = vmul.f32 %v4244_v31, %v3598_v25  ;;  %v1591_v63 = vmul.f32 %v4250_v14, %v3842_v41  ;;  %480 = vst.msk [vmem:[#allocation2 + $0x68] sm:$0xff] %vm331_vm0, %v464_v60 }
 0x64f   : > { %1020 = vrot.lane.b32.xlu1 %v987_v56, %s3216_s29  ;;  %1018 = vrot.lane.b32.xlu0 %v986_v59, %s3216_s29  ;;  %470 = vst.msk [vmem:[#allocation2 + $0x18] sm:$0xff] %vm331_vm0, %v454_v20  ;;  %v990_v22 = vmul.f32 %v4244_v31, %v3605_v48  ;;  %v458_v25 = vmul.f32 %v4233_v44, %v3374_v1  ;;  %v4636_v1 = vld [vmem:[#allocation13_spill] sm:$0xff]  ;;  %v4645_v56 = vld [vmem:[#allocation7_spill] sm:$0xff] }
 0x650   : > { %472 = vst.msk [vmem:[#allocation2 + $0x28] sm:$0xff] %vm331_vm0, %v456_v38  ;;  %v991_v0 = vmul.f32 %v4244_v31, %v3610_v52  ;;  %v459_v41 = vmul.f32 %v4233_v44, %v3376_v2  ;;  %v1593_v48 = vmul.f32 %v4250_v14, %v4636_v1  ;;  %v992_v10 = vmul.f32 %v4244_v31, %v4637_v15  ;;  %v4638_v2 = vld [vmem:[#allocation4_spill] sm:$0xff]  ;;  %v4650_v38 = vld [vmem:[#allocation11_spill] sm:$0xff]  ;;  %v4655_v1 = vld [vmem:[#allocation21_spill] sm:$0xff] }
 0x651   : > { %474 = vst.msk [vmem:[#allocation2 + $0x38] sm:$0xff] %vm331_vm0, %v458_v25  ;;  %v460_v52 = vmul.f32 %v4233_v44, %v3378_v3  ;;  %v993_v49 = vmul.f32 %v4244_v31, %v4638_v2  ;;  %v4640_v3 = vld [vmem:[#allocation15_spill] sm:$0xff]  ;;  %v994_v12 = vmul.f32 %v4244_v31, %v4641_v43  ;;  %v995_v45 = vmul.f32 %v4244_v31, %v4642_v4  ;;  %v4653_v25 = vld [vmem:[#allocation20_spill] sm:$0xff]  ;;  %v2306_v43 = vld [vmem:[%s4565_s5 + $0x18] sm:$0xff] }
 0x652   : > { %475 = vst.msk [vmem:[#allocation2 + $0x40] sm:$0xff] %vm331_vm0, %v459_v41  ;;  %v1595_v34 = vmul.f32 %v4250_v14, %v4640_v3  ;;  %v996_v59 = vmul.f32 %v4244_v31, %v4645_v56  ;;  %v999_v44 = vmul.f32 %v4244_v31, %v4651_v9  ;;  %v4654_v41 = vld [vmem:[#allocation22_spill] sm:$0xff]  ;;  %v2315_v15 = vld [vmem:[%s4565_s5 + $0x60] sm:$0xff]  ;;  %v2308_v3 = vld [vmem:[%s4565_s5 + $0x28] sm:$0xff] }
 0x653   : > { %1622 = vrot.lane.b32.xlu1 %v1589_v29, %s3217_s19  ;;  %1620 = vrot.lane.b32.xlu0 %v1588_v21, %s3217_s19  ;;  %476 = vst.msk [vmem:[#allocation2 + $0x48] sm:$0xff] %vm331_vm0, %v460_v52  ;;  %v997_v29 = vmul.f32 %v4244_v31, %v4646_v6  ;;  %v4647_v21 = vld [vmem:[#allocation18_spill] sm:$0xff]  ;;  %v4656_v52 = vld [vmem:[#allocation23_spill] sm:$0xff] }
 0x654   : > { %v1598_v20 = vmul.f32 %v4250_v14, %v4647_v21  ;;  %v1603_v2 = vmul.f32 %v4250_v14, %v4656_v52 }
 0x657   : > { %2187 = vrot.lane.b32.xlu1 %v2186_v50, %s3216_s29  ;;  %1022 = vrot.lane.b32.xlu0 %v988_v39, %s3216_s29  ;;  %v4649_v50 = vld [vmem:[#allocation9_spill] sm:$0xff] }
 0x658   : > { %v998_v39 = vmul.f32 %v4244_v31, %v4649_v50 }
 0x65b   : > { %1024 = vrot.lane.b32.xlu1 %v989_v61, %s3216_s29  ;;  %1624 = vrot.lane.b32.xlu0 %v1590_v62, %s3217_s19  ;;  %v1000_v61 = vmul.f32 %v4244_v31, %v4650_v38  ;;  %v2318_v62 = vld [vmem:[%s4565_s5 + $0x78] sm:$0xff] }
 0x65c   : > { %3084 = vmatprep.subr.mxu0 %v2318_v62  ;;  %3140 = vmatprep.subr.mxu1 %v2318_v62 }
 0x65d   : > { %3085 = vmatpush3.msra.mxu0 %v2318_v62  ;;  %3156 = vmatpush3.msra.mxu1 %v2318_v62  ;;  %v4657_v62 = vld [vmem:[#allocation24_spill] sm:$0xff] }
 0x65e   : > { %3086 = vmatprep.subr.mxu0 %v2317_v35  ;;  %3141 = vmatprep.subr.mxu1 %v2317_v35 }
 0x65f   : > { %1626 = vrot.lane.b32.xlu1 %v1591_v63, %s3217_s19  ;;  %1026 = vrot.lane.b32.xlu0 %v990_v22, %s3216_s29  ;;  %v4652_v63 = vld [vmem:[#allocation12_spill] sm:$0xff] }
 0x660   : > { %v1001_v22 = vmul.f32 %v4244_v31, %v4652_v63  ;;  %3087 = vmatpush3.msra.mxu0 %v2317_v35  ;;  %3157 = vmatpush3.msra.mxu1 %v2317_v35  ;;  %v1602_v31 = vmul.f32 %v4250_v14, %v4654_v41 }
 0x663   : > { %1028 = vrot.lane.b32.xlu1 %v991_v0, %s3216_s29  ;;  %1628 = vrot.lane.b32.xlu0 %v1592_v40, %s3217_s19  ;;  %v1600_v0 = vmul.f32 %v4250_v14, %v4653_v25  ;;  %v2316_v40 = vld [vmem:[%s4565_s5 + $0x68] sm:$0xff] }
 0x664   : > { %3088 = vmatprep.subr.mxu0 %v2316_v40  ;;  %3142 = vmatprep.subr.mxu1 %v2316_v40 }
 0x665   : > { %3089 = vmatpush3.msra.mxu0 %v2316_v40  ;;  %3158 = vmatpush3.msra.mxu1 %v2316_v40 }
 0x666   : > { %3090 = vmatprep.subr.mxu0 %v2315_v15  ;;  %3143 = vmatprep.subr.mxu1 %v2315_v15 }
 0x667   : > { %1630 = vrot.lane.b32.xlu1 %v1593_v48, %s3217_s19  ;;  %1030 = vrot.lane.b32.xlu0 %v992_v10, %s3216_s29  ;;  %v1601_v48 = vmul.f32 %v4250_v14, %v4655_v1  ;;  %v2314_v10 = vld [vmem:[%s4565_s5 + $0x58] sm:$0xff]  ;;  %v2311_v14 = vld [vmem:[%s4565_s5 + $0x40] sm:$0xff] }
 0x668   : > { %3091 = vmatpush3.msra.mxu0 %v2315_v15  ;;  %3159 = vmatpush3.msra.mxu1 %v2315_v15 }
 0x669   : > { %3092 = vmatprep.subr.mxu0 %v2314_v10  ;;  %3144 = vmatprep.subr.mxu1 %v2314_v10 }
 0x66a   : > { %3093 = vmatpush3.msra.mxu0 %v2314_v10  ;;  %3160 = vmatpush3.msra.mxu1 %v2314_v10 }
 0x66b   : > { %1032 = vrot.lane.b32.xlu1 %v993_v49, %s3216_s29  ;;  %1632 = vrot.lane.b32.xlu0 %v1594_v33, %s3217_s19  ;;  %v2313_v49 = vld [vmem:[%s4565_s5 + $0x50] sm:$0xff]  ;;  %v2310_v33 = vld [vmem:[%s4565_s5 + $0x38] sm:$0xff] }
 0x66c   : > { %3094 = vmatprep.subr.mxu0 %v2313_v49  ;;  %3145 = vmatprep.subr.mxu1 %v2313_v49 }
 0x66d   : > { %3095 = vmatpush3.msra.mxu0 %v2313_v49  ;;  %3161 = vmatpush3.msra.mxu1 %v2313_v49 }
 0x66e   : > { %3096 = vmatprep.subr.mxu0 %v2312_v23  ;;  %3146 = vmatprep.subr.mxu1 %v2312_v23 }
 0x66f   : > { %1634 = vrot.lane.b32.xlu1 %v1595_v34, %s3217_s19  ;;  %1034 = vrot.lane.b32.xlu0 %v994_v12, %s3216_s29  ;;  %v2307_v34 = vld [vmem:[%s4565_s5 + $0x20] sm:$0xff]  ;;  %v2305_v12 = vld [vmem:[%s4565_s5 + $0x10] sm:$0xff] }
 0x670   : > { %3097 = vmatpush3.msra.mxu0 %v2312_v23  ;;  %3162 = vmatpush3.msra.mxu1 %v2312_v23 }
 0x671   : > { %3098 = vmatprep.subr.mxu0 %v2311_v14  ;;  %3147 = vmatprep.subr.mxu1 %v2311_v14 }
 0x672   : > { %3099 = vmatpush3.msra.mxu0 %v2311_v14  ;;  %3163 = vmatpush3.msra.mxu1 %v2311_v14 }
 0x673   : > { %1036 = vrot.lane.b32.xlu1 %v995_v45, %s3216_s29  ;;  %1636 = vrot.lane.b32.xlu0 %v1596_v36, %s3217_s19  ;;  %v2304_v45 = vld [vmem:[%s4565_s5 + $0x8] sm:$0xff] }
 0x674   : > { %3100 = vmatprep.subr.mxu0 %v2310_v33  ;;  %3148 = vmatprep.subr.mxu1 %v2310_v33 }
 0x675   : > { %3101 = vmatpush3.msra.mxu0 %v2310_v33  ;;  %3164 = vmatpush3.msra.mxu1 %v2310_v33 }
 0x676   : > { %3102 = vmatprep.subr.mxu0 %v2309_v24  ;;  %3149 = vmatprep.subr.mxu1 %v2309_v24 }
 0x677   : > { %1638 = vrot.lane.b32.xlu1 %v1597_v19, %s3217_s19  ;;  %1038 = vrot.lane.b32.xlu0 %v996_v59, %s3216_s29 }
 0x678   : > { %3103 = vmatpush3.msra.mxu0 %v2309_v24  ;;  %3165 = vmatpush3.msra.mxu1 %v2309_v24 }
 0x679   : > { %3104 = vmatprep.subr.mxu0 %v2308_v3  ;;  %3150 = vmatprep.subr.mxu1 %v2308_v3 }
 0x67a   : > { %3105 = vmatpush3.msra.mxu0 %v2308_v3  ;;  %3166 = vmatpush3.msra.mxu1 %v2308_v3 }
 0x67b   : > { %1040 = vrot.lane.b32.xlu1 %v997_v29, %s3216_s29  ;;  %1640 = vrot.lane.b32.xlu0 %v1598_v20, %s3217_s19 }
 0x67c   : > { %3106 = vmatprep.subr.mxu0 %v2307_v34  ;;  %3151 = vmatprep.subr.mxu1 %v2307_v34 }
 0x67d   : > { %3107 = vmatpush3.msra.mxu0 %v2307_v34  ;;  %3167 = vmatpush3.msra.mxu1 %v2307_v34 }
 0x67e   : > { %3108 = vmatprep.subr.mxu0 %v2306_v43  ;;  %3152 = vmatprep.subr.mxu1 %v2306_v43 }
 0x67f   : > { %1642 = vrot.lane.b32.xlu1 %v1599_v26, %s3217_s19  ;;  %1042 = vrot.lane.b32.xlu0 %v998_v39, %s3216_s29 }
 0x680   : > { %3109 = vmatpush3.msra.mxu0 %v2306_v43  ;;  %3168 = vmatpush3.msra.mxu1 %v2306_v43 }
 0x681   : > { %3110 = vmatprep.subr.mxu0 %v2305_v12  ;;  %3153 = vmatprep.subr.mxu1 %v2305_v12 }
 0x682   : > { %3111 = vmatpush3.msra.mxu0 %v2305_v12  ;;  %3169 = vmatpush3.msra.mxu1 %v2305_v12 }
 0x683   : > { %1046 = vrot.lane.b32.xlu1 %v1000_v61, %s3216_s29  ;;  %1044 = vrot.lane.b32.xlu0 %v999_v44, %s3216_s29 }
 0x684   : > { %3112 = vmatprep.subr.mxu0 %v2304_v45  ;;  %3154 = vmatprep.subr.mxu1 %v2304_v45 }
 0x685   : > { %3113 = vmatpush3.msra.mxu0 %v2304_v45  ;;  %3170 = vmatpush3.msra.mxu1 %v2304_v45 }
 0x686   : > { %3114 = vmatprep.subr.mxu0 %v2303_v16  ;;  %3155 = vmatprep.subr.mxu1 %v2303_v16 }
 0x687   : > { %1048 = vrot.lane.b32.xlu1 %v1001_v22, %s3216_s29  ;;  %1644 = vrot.lane.b32.xlu0 %v1600_v0, %s3217_s19 }
 0x688   : > { %3115 = vmatpush3.msra.mxu0 %v2303_v16  ;;  %3171 = vmatpush3.msra.mxu1 %v2303_v16 }
 0x68b   : > { %1648 = vrot.lane.b32.xlu1 %v1602_v31, %s3217_s19  ;;  %1646 = vrot.lane.b32.xlu0 %v1601_v48, %s3217_s19 }
 0x68f   : > { %1650 = vrot.lane.b32.xlu1 %v1603_v2, %s3217_s19 }
 0x6c1   : > { %v1021_v17 = vpop.permute.xlu1 %1020  ;;  %v1019_v4 = vpop.permute.xlu0 %1018 }
 0x6c2   : > { %1068 = vst.msk [vmem:[#allocation2 + $0x8] sm:$0xff] %vm1066_vm1, %v1021_v17  ;;  %1067 = vst.msk [vmem:[#allocation2] sm:$0xff] %vm1066_vm1, %v1019_v4 }
 0x6c5   : > { %v1623_v36 = vpop.permute.xlu1 %1622  ;;  %v1621_v27 = vpop.permute.xlu0 %1620 }
 0x6c6   : > { %1670 = vst.msk [vmem:[#allocation2 + $0x8] sm:$0xff] %vm1668_vm2, %v1623_v36  ;;  %1669 = vst.msk [vmem:[#allocation2] sm:$0xff] %vm1668_vm2, %v1621_v27 }
 0x6c9   : > { %v2188_v5 = vpop.permute.xlu1 %2187  ;;  %v1023_v19 = vpop.permute.xlu0 %1022 }
 0x6ca   : > { %1069 = vst.msk [vmem:[#allocation2 + $0x10] sm:$0xff] %vm1066_vm1, %v1023_v19  ;;  %v2191_v56 = vmul.f32 %v2188_v5, %v4072_v32  ;;  %v2190_v59 = vmul.f32 %v2188_v5, %v4068_v37  ;;  %v2193_v6 = vmul.f32 %v2188_v5, %v4080_v18  ;;  %v2192_v29 = vmul.f32 %v2188_v5, %v4076_v57 }
 0x6cb   : > { %v2195_v21 = vmul.f32 %v2188_v5, %v4094_v51  ;;  %v2194_v20 = vmul.f32 %v2188_v5, %v4088_v11  ;;  %v2197_v8 = vmul.f32 %v2188_v5, %v4109_v28  ;;  %v2196_v7 = vmul.f32 %v2188_v5, %v4102_v30 }
 0x6cc   : > { %2224 = vrot.lane.b32.xlu1 %v2191_v56, %s3218_s26  ;;  %2222 = vrot.lane.b32.xlu0 %v2190_v59, %s3218_s26  ;;  %v2199_v26 = vmul.f32 %v2188_v5, %v4123_v13  ;;  %v2198_v50 = vmul.f32 %v2188_v5, %v4116_v42  ;;  %v2201_v39 = vmul.f32 %v2188_v5, %v4135_v54 }
 0x6cd   : > { %v1025_v58 = vpop.permute.xlu1 %1024  ;;  %v1625_v60 = vpop.permute.xlu0 %1624  ;;  %v2200_v38 = vmul.f32 %v2188_v5, %v4128_v46  ;;  %v2204_v61 = vmul.f32 %v2188_v5, %v4152_v53  ;;  %v2202_v9 = vmul.f32 %v2188_v5, %v4140_v55  ;;  %v2205_v44 = vmul.f32 %v2188_v5, %v4159_v47 }
 0x6ce   : > { %1070 = vst.msk [vmem:[#allocation2 + $0x18] sm:$0xff] %vm1066_vm1, %v1025_v58  ;;  %v2203_v35 = vmul.f32 %v2188_v5, %v4657_v62 }
 0x6cf   : > { %1671 = vst.msk [vmem:[#allocation2 + $0x10] sm:$0xff] %vm1668_vm2, %v1625_v60 }
 0x6d0   : > { %2228 = vrot.lane.b32.xlu1 %v2193_v6, %s3218_s26  ;;  %2226 = vrot.lane.b32.xlu0 %v2192_v29, %s3218_s26 }
 0x6d1   : > { %v1627_v32 = vpop.permute.xlu1 %1626  ;;  %v1027_v37 = vpop.permute.xlu0 %1026 }
 0x6d2   : > { %1672 = vst.msk [vmem:[#allocation2 + $0x18] sm:$0xff] %vm1668_vm2, %v1627_v32 }
 0x6d3   : > { %1071 = vst.msk [vmem:[#allocation2 + $0x20] sm:$0xff] %vm1066_vm1, %v1027_v37 }
 0x6d4   : > { %2232 = vrot.lane.b32.xlu1 %v2195_v21, %s3218_s26  ;;  %2230 = vrot.lane.b32.xlu0 %v2194_v20, %s3218_s26 }
 0x6d5   : > { %v1029_v18 = vpop.permute.xlu1 %1028  ;;  %v1629_v57 = vpop.permute.xlu0 %1628 }
 0x6d6   : > { %1072 = vst.msk [vmem:[#allocation2 + $0x28] sm:$0xff] %vm1066_vm1, %v1029_v18 }
 0x6d7   : > { %1673 = vst.msk [vmem:[#allocation2 + $0x20] sm:$0xff] %vm1668_vm2, %v1629_v57 }
 0x6d8   : > { %2236 = vrot.lane.b32.xlu1 %v2197_v8, %s3218_s26  ;;  %2234 = vrot.lane.b32.xlu0 %v2196_v7, %s3218_s26  ;;  %v2626_v8 = vld [vmem:[%s4566_s6] ss:$0 sm:$0xff] }
 0x6d9   : > { %v1631_v51 = vpop.permute.xlu1 %1630  ;;  %v1031_v11 = vpop.permute.xlu0 %1030 }
 0x6da   : > { %1674 = vst.msk [vmem:[#allocation2 + $0x28] sm:$0xff] %vm1668_vm2, %v1631_v51 }
 0x6db   : > { %1073 = vst.msk [vmem:[#allocation2 + $0x30] sm:$0xff] %vm1066_vm1, %v1031_v11 }
 0x6dc   : > { %2240 = vrot.lane.b32.xlu1 %v2199_v26, %s3218_s26  ;;  %2238 = vrot.lane.b32.xlu0 %v2198_v50, %s3218_s26 }
 0x6dd   : > { %v1033_v28 = vpop.permute.xlu1 %1032  ;;  %v1633_v30 = vpop.permute.xlu0 %1632 }
 0x6de   : > { %1074 = vst.msk [vmem:[#allocation2 + $0x38] sm:$0xff] %vm1066_vm1, %v1033_v28 }
 0x6df   : > { %1675 = vst.msk [vmem:[#allocation2 + $0x30] sm:$0xff] %vm1668_vm2, %v1633_v30 }
 0x6e0   : > { %2244 = vrot.lane.b32.xlu1 %v2201_v39, %s3218_s26  ;;  %2242 = vrot.lane.b32.xlu0 %v2200_v38, %s3218_s26 }
 0x6e1   : > { %v1635_v13 = vpop.permute.xlu1 %1634  ;;  %v1035_v42 = vpop.permute.xlu0 %1034 }
 0x6e2   : > { %1676 = vst.msk [vmem:[#allocation2 + $0x38] sm:$0xff] %vm1668_vm2, %v1635_v13 }
 0x6e3   : > { %1075 = vst.msk [vmem:[#allocation2 + $0x40] sm:$0xff] %vm1066_vm1, %v1035_v42 }
 0x6e4   : > { %2250 = vrot.lane.b32.xlu1 %v2204_v61, %s3218_s26  ;;  %2246 = vrot.lane.b32.xlu0 %v2202_v9, %s3218_s26 }
 0x6e5   : > { %v1037_v54 = vpop.permute.xlu1 %1036  ;;  %v1637_v46 = vpop.permute.xlu0 %1636 }
 0x6e6   : > { %1076 = vst.msk [vmem:[#allocation2 + $0x48] sm:$0xff] %vm1066_vm1, %v1037_v54 }
 0x6e7   : > { %1677 = vst.msk [vmem:[#allocation2 + $0x40] sm:$0xff] %vm1668_vm2, %v1637_v46 }
 0x6e8   : > { %2252 = vrot.lane.b32.xlu1 %v2205_v44, %s3218_s26  ;;  %2248 = vrot.lane.b32.xlu0 %v2203_v35, %s3218_s26 }
 0x6e9   : > { %v1639_v53 = vpop.permute.xlu1 %1638  ;;  %v1039_v55 = vpop.permute.xlu0 %1038 }
 0x6ea   : > { %1678 = vst.msk [vmem:[#allocation2 + $0x48] sm:$0xff] %vm1668_vm2, %v1639_v53 }
 0x6eb   : > { %1077 = vst.msk [vmem:[#allocation2 + $0x50] sm:$0xff] %vm1066_vm1, %v1039_v55 }
 0x6ed   : > { %v1041_v63 = vpop.permute.xlu1 %1040  ;;  %v1641_v22 = vpop.permute.xlu0 %1640 }
 0x6ee   : > { %1078 = vst.msk [vmem:[#allocation2 + $0x58] sm:$0xff] %vm1066_vm1, %v1041_v63 }
 0x6ef   : > { %1679 = vst.msk [vmem:[#allocation2 + $0x50] sm:$0xff] %vm1668_vm2, %v1641_v22 }
 0x6f1   : > { %v1643_v25 = vpop.permute.xlu1 %1642  ;;  %v1043_v47 = vpop.permute.xlu0 %1042 }
 0x6f2   : > { %1680 = vst.msk [vmem:[#allocation2 + $0x58] sm:$0xff] %vm1668_vm2, %v1643_v25 }
 0x6f3   : > { %1079 = vst.msk [vmem:[#allocation2 + $0x60] sm:$0xff] %vm1066_vm1, %v1043_v47 }
 0x6f5   : > { %v1047_v0 = vpop.permute.xlu1 %1046  ;;  %v1045_v40 = vpop.permute.xlu0 %1044 }
 0x6f6   : > { %1081 = vst.msk [vmem:[#allocation2 + $0x70] sm:$0xff] %vm1066_vm1, %v1047_v0  ;;  %1080 = vst.msk [vmem:[#allocation2 + $0x68] sm:$0xff] %vm1066_vm1, %v1045_v40 }
 0x6f9   : > { %v1049_v41 = vpop.permute.xlu1 %1048  ;;  %v1645_v31 = vpop.permute.xlu0 %1644 }
 0x6fa   : > { %1082 = vst.msk [vmem:[#allocation2 + $0x78] sm:$0xff] %vm1066_vm1, %v1049_v41 }
 0x6fb   : > { %1681 = vst.msk [vmem:[#allocation2 + $0x60] sm:$0xff] %vm1668_vm2, %v1645_v31 }
 0x6fd   : > { %v1649_v1 = vpop.permute.xlu1 %1648  ;;  %v1647_v48 = vpop.permute.xlu0 %1646 }
 0x6fe   : > { %1683 = vst.msk [vmem:[#allocation2 + $0x70] sm:$0xff] %vm1668_vm2, %v1649_v1  ;;  %1682 = vst.msk [vmem:[#allocation2 + $0x68] sm:$0xff] %vm1668_vm2, %v1647_v48 }
 0x701   : > { %v1651_v15 = vpop.permute.xlu1 %1650 }
 0x702   : > { %1684 = vst.msk [vmem:[#allocation2 + $0x78] sm:$0xff] %vm1668_vm2, %v1651_v15 }
 0x73e   : > { %v2225_v10 = vpop.permute.xlu1 %2224  ;;  %v2223_v52 = vpop.permute.xlu0 %2222 }
 0x73f   : > { %2272 = vst.msk [vmem:[#allocation2 + $0x8] sm:$0xff] %vm2270_vm3, %v2225_v10  ;;  %2271 = vst.msk [vmem:[#allocation2] sm:$0xff] %vm2270_vm3, %v2223_v52 }
 0x742   : > { %v2229_v2 = vpop.permute.xlu1 %2228  ;;  %v2227_v49 = vpop.permute.xlu0 %2226 }
 0x743   : > { %2274 = vst.msk [vmem:[#allocation2 + $0x18] sm:$0xff] %vm2270_vm3, %v2229_v2  ;;  %2273 = vst.msk [vmem:[#allocation2 + $0x10] sm:$0xff] %vm2270_vm3, %v2227_v49 }
 0x746   : > { %v2233_v23 = vpop.permute.xlu1 %2232  ;;  %v2231_v14 = vpop.permute.xlu0 %2230  ;;  %v2287_v33 = vld [vmem:[#allocation2] sm:$0xff]  ;;  %v2288_v24 = vld [vmem:[#allocation2 + $0x8] sm:$0xff] }
 0x747   : > { %2276 = vst.msk [vmem:[#allocation2 + $0x28] sm:$0xff] %vm2270_vm3, %v2233_v23  ;;  %2275 = vst.msk [vmem:[#allocation2 + $0x20] sm:$0xff] %vm2270_vm3, %v2231_v14  ;;  %3116 = vmatprep.mubr.f32.mxu0 %v2287_v33 }
 0x748   : > { %3117 = vmatmul.mubr.f32.vlgmr.msra.gmra.mxu0 %v2288_v24 }
 0x74a   : > { %v2237_v3 = vpop.permute.xlu1 %2236  ;;  %v2235_v34 = vpop.permute.xlu0 %2234  ;;  %v2289_v43 = vld [vmem:[#allocation2 + $0x10] sm:$0xff]  ;;  %v2290_v12 = vld [vmem:[#allocation2 + $0x18] sm:$0xff] }
 0x74b   : > { %2278 = vst.msk [vmem:[#allocation2 + $0x38] sm:$0xff] %vm2270_vm3, %v2237_v3  ;;  %2277 = vst.msk [vmem:[#allocation2 + $0x30] sm:$0xff] %vm2270_vm3, %v2235_v34  ;;  %3119 = vmatprep.mubr.f32.mxu0 %v2289_v43 }
 0x74c   : > { %3120 = vmatmul.mubr.f32.gmra.mxu0 %v2290_v12 }
 0x74e   : > { %v2241_v17 = vpop.permute.xlu1 %2240  ;;  %v2239_v4 = vpop.permute.xlu0 %2238  ;;  %v2291_v45 = vld [vmem:[#allocation2 + $0x20] sm:$0xff]  ;;  %v2292_v16 = vld [vmem:[#allocation2 + $0x28] sm:$0xff] }
 0x74f   : > { %2280 = vst.msk [vmem:[#allocation2 + $0x48] sm:$0xff] %vm2270_vm3, %v2241_v17  ;;  %2279 = vst.msk [vmem:[#allocation2 + $0x40] sm:$0xff] %vm2270_vm3, %v2239_v4  ;;  %3122 = vmatprep.mubr.f32.mxu0 %v2291_v45 }
 0x750   : > { %3123 = vmatmul.mubr.f32.gmra.mxu0 %v2292_v16 }
 0x752   : > { %v2245_v36 = vpop.permute.xlu1 %2244  ;;  %v2243_v27 = vpop.permute.xlu0 %2242  ;;  %v2293_v5 = vld [vmem:[#allocation2 + $0x30] sm:$0xff]  ;;  %v2294_v19 = vld [vmem:[#allocation2 + $0x38] sm:$0xff] }
 0x753   : > { %2282 = vst.msk [vmem:[#allocation2 + $0x58] sm:$0xff] %vm2270_vm3, %v2245_v36  ;;  %2281 = vst.msk [vmem:[#allocation2 + $0x50] sm:$0xff] %vm2270_vm3, %v2243_v27  ;;  %3125 = vmatprep.mubr.f32.mxu0 %v2293_v5 }
 0x754   : > { %3126 = vmatmul.mubr.f32.gmra.mxu0 %v2294_v19 }
 0x756   : > { %v2251_v56 = vpop.permute.xlu1 %2250  ;;  %v2247_v59 = vpop.permute.xlu0 %2246  ;;  %v2295_v58 = vld [vmem:[#allocation2 + $0x40] sm:$0xff]  ;;  %v2296_v60 = vld [vmem:[#allocation2 + $0x48] sm:$0xff] }
 0x757   : > { %2285 = vst.msk [vmem:[#allocation2 + $0x70] sm:$0xff] %vm2270_vm3, %v2251_v56  ;;  %2283 = vst.msk [vmem:[#allocation2 + $0x60] sm:$0xff] %vm2270_vm3, %v2247_v59  ;;  %3128 = vmatprep.mubr.f32.mxu0 %v2295_v58 }
 0x758   : > { %3129 = vmatmul.mubr.f32.gmra.mxu0 %v2296_v60 }
 0x75a   : > { %v2253_v6 = vpop.permute.xlu1 %2252  ;;  %v2249_v29 = vpop.permute.xlu0 %2248  ;;  %v2297_v32 = vld [vmem:[#allocation2 + $0x50] sm:$0xff]  ;;  %v2298_v37 = vld [vmem:[#allocation2 + $0x58] sm:$0xff] }
 0x75b   : > { %2286 = vst.msk [vmem:[#allocation2 + $0x78] sm:$0xff] %vm2270_vm3, %v2253_v6  ;;  %2284 = vst.msk [vmem:[#allocation2 + $0x68] sm:$0xff] %vm2270_vm3, %v2249_v29  ;;  %3131 = vmatprep.mubr.f32.mxu0 %v2297_v32 }
 0x75c   : > { %3132 = vmatmul.mubr.f32.gmra.mxu0 %v2298_v37 }
 0x75e   : > { %v2299_v21 = vld [vmem:[#allocation2 + $0x60] sm:$0xff]  ;;  %v2301_v20 = vld [vmem:[#allocation2 + $0x70] sm:$0xff] }
 0x75f   : > { %3134 = vmatprep.mubr.f32.mxu0 %v2299_v21  ;;  %3137 = vmatprep.mubr.f32.mxu1 %v2301_v20 }
 0x762   : > { %v2300_v18 = vld [vmem:[#allocation2 + $0x68] sm:$0xff]  ;;  %v2302_v57 = vld [vmem:[#allocation2 + $0x78] sm:$0xff] }
 0x763   : > { %3135 = vmatmul.mubr.f32.gmra.mxu0 %v2300_v18  ;;  %3138 = vmatmul.mubr.f32.vlgmr.msra.gmra.mxu1 %v2302_v57 }
 0x808   : > { %v3118_v7 = vpop.f32.mrf.mxu0 }
 0x809   : > { %v2398_v51 = vadd.f32 %v3118_v7, %v2626_v8 }
 0x80a   : > { %v2392_v11 = vpop.f32.mrf.mxu0 }
 0x80b   : > { %2472 = vst.msk [vmem:[%s4523_s27 + $0x8] sm:$0xff] %vm331_vm0, %v2398_v51  ;;  %v2393_v26 = vadd.f32 %v2626_v8, %v2392_v11 }
 0x80c   : > { %v3121_v50 = vpop.f32.mrf.mxu0 }
 0x80d   : > { %2471 = vst.msk [vmem:[%s4523_s27] sm:$0xff] %vm331_vm0, %v2393_v26  ;;  %v2408_v28 = vadd.f32 %v3121_v50, %v2626_v8 }
 0x80e   : > { %v2402_v30 = vpop.f32.mrf.mxu0 }
 0x80f   : > { %2474 = vst.msk [vmem:[%s4523_s27 + $0x18] sm:$0xff] %vm331_vm0, %v2408_v28  ;;  %v2403_v39 = vadd.f32 %v2626_v8, %v2402_v30 }
 0x810   : > { %v3124_v38 = vpop.f32.mrf.mxu0 }
 0x811   : > { %2473 = vst.msk [vmem:[%s4523_s27 + $0x10] sm:$0xff] %vm331_vm0, %v2403_v39  ;;  %v2418_v13 = vadd.f32 %v3124_v38, %v2626_v8 }
 0x812   : > { %v2412_v42 = vpop.f32.mrf.mxu0 }
 0x813   : > { %2476 = vst.msk [vmem:[%s4523_s27 + $0x28] sm:$0xff] %vm331_vm0, %v2418_v13  ;;  %v2413_v61 = vadd.f32 %v2626_v8, %v2412_v42 }
 0x814   : > { %v3127_v9 = vpop.f32.mrf.mxu0 }
 0x815   : > { %2475 = vst.msk [vmem:[%s4523_s27 + $0x20] sm:$0xff] %vm331_vm0, %v2413_v61  ;;  %v2428_v54 = vadd.f32 %v3127_v9, %v2626_v8 }
 0x816   : > { %v2422_v46 = vpop.f32.mrf.mxu0 }
 0x817   : > { %2478 = vst.msk [vmem:[%s4523_s27 + $0x38] sm:$0xff] %vm331_vm0, %v2428_v54  ;;  %v2423_v44 = vadd.f32 %v2626_v8, %v2422_v46 }
 0x818   : > { %v3130_v62 = vpop.f32.mrf.mxu0 }
 0x819   : > { %2477 = vst.msk [vmem:[%s4523_s27 + $0x30] sm:$0xff] %vm331_vm0, %v2423_v44  ;;  %v2438_v35 = vadd.f32 %v3130_v62, %v2626_v8 }
 0x81a   : > { %v2432_v53 = vpop.f32.mrf.mxu0 }
 0x81b   : > { %2480 = vst.msk [vmem:[%s4523_s27 + $0x48] sm:$0xff] %vm331_vm0, %v2438_v35  ;;  %v2433_v55 = vadd.f32 %v2626_v8, %v2432_v53 }
 0x81c   : > { %v3133_v63 = vpop.f32.mrf.mxu0 }
 0x81d   : > { %2479 = vst.msk [vmem:[%s4523_s27 + $0x40] sm:$0xff] %vm331_vm0, %v2433_v55  ;;  %v2448_v22 = vadd.f32 %v3133_v63, %v2626_v8 }
 0x81e   : > { %v2442_v25 = vpop.f32.mrf.mxu0 }
 0x81f   : > { %2482 = vst.msk [vmem:[%s4523_s27 + $0x58] sm:$0xff] %vm331_vm0, %v2448_v22  ;;  %v2443_v47 = vadd.f32 %v2626_v8, %v2442_v25 }
 0x821   : > { %2481 = vst.msk [vmem:[%s4523_s27 + $0x50] sm:$0xff] %vm331_vm0, %v2443_v47 }
 0x823   : > { %v3136_v0 = vpop.f32.mrf.mxu0  ;;  %v3139_v40 = vpop.f32.mrf.mxu1 }
 0x824   : > { %v2458_v41 = vadd.f32 %v3136_v0, %v2626_v8  ;;  %v2468_v31 = vadd.f32 %v3139_v40, %v2626_v8 }
 0x825   : > { %v2452_v1 = vpop.f32.mrf.mxu0  ;;  %v2462_v48 = vpop.f32.mrf.mxu1 }
 0x826   : > { %2484 = vst.msk [vmem:[%s4523_s27 + $0x68] sm:$0xff] %vm331_vm0, %v2458_v41  ;;  %2486 = vst.msk [vmem:[%s4523_s27 + $0x78] sm:$0xff] %vm331_vm0, %v2468_v31  ;;  %v2453_v15 = vadd.f32 %v2626_v8, %v2452_v1  ;;  %v2463_v10 = vadd.f32 %v2626_v8, %v2462_v48 }
 0x828   : > { %2483 = vst.msk [vmem:[%s4523_s27 + $0x60] sm:$0xff] %vm331_vm0, %v2453_v15  ;;  %2485 = vst.msk [vmem:[%s4523_s27 + $0x70] sm:$0xff] %vm331_vm0, %v2463_v10 }
 0x829 PF: > { %s17_s24 = sadd.s32 1, %s3213_s24  }
 0x82a   : > { %p14_p4 = scmp.ge.s32.totalorder %s17_s24, 6  }
 0x82c   :  { %16 = sbr.rel (!%p14_p4) target bundleno = 1 (0x1), region = 85 }

</bundles_post_ra>
